<compile_context>
chip_gen: v7x
topology: tpu7x:2x2x1
jax: 0.10.0
libtpu: 0.0.40
codegen_flags: <defaults>
</compile_context>

<pallas_src>
import functools
import math

import jax
import jax.numpy as jnp
import numpy as np
from jax.experimental import pallas as pl
from jax.experimental.pallas import tpu as pltpu

LN_EPS = 1e-6


def _layernorm(x, a, b, eps=LN_EPS):
    # torch LayerNorm-from-scratch: unbiased std (divisor D-1), div by (std+eps)
    d = x.shape[-1]
    mean = jnp.mean(x, axis=-1, keepdims=True)
    var = jnp.sum((x - mean) ** 2, axis=-1, keepdims=True) / (d - 1)
    std = jnp.sqrt(var)
    return a * (x - mean) / (std + eps) + b


# ----------------------------- Pallas kernel ------------------------------- #

def make_fused_encoder_kernel(n_layers, batch, seq, d_model, heads, d_k):
    """Whole forward (N layers + final LayerNorm) in one kernel invocation."""

    def kernel(x_ref,
               wqkv_ref, bqkv_ref, wo_ref, bo_ref,
               lna_ref, lnb_ref,
               w1_ref, b1_ref, w2_ref, b2_ref,
               na_ref, nb_ref,
               o_ref):
        x = x_ref[...]                            # (B*L, D) slab, stays in vregs/VMEM

        for l in range(n_layers):                 # static unroll; static weight index
            # --- fused QKV projection: one (B*L,D) @ (D,3D) matmul -----------
            qkv = jnp.dot(x, wqkv_ref[l],
                          preferred_element_type=jnp.float32) + bqkv_ref[l]
            q = qkv[:, :d_model]                  # 1/sqrt(d_k) pre-folded into Wq/bq
            k = qkv[:, d_model:2 * d_model]
            v = qkv[:, 2 * d_model:]
            q3 = q.reshape(batch, seq, d_model)
            k3 = k.reshape(batch, seq, d_model)
            v3 = v.reshape(batch, seq, d_model)

            # --- multi-head attention: batched over B, per-head lane slices --
            head_outs = []
            for h in range(heads):
                sl = slice(h * d_k, (h + 1) * d_k)
                qh, kh, vh = q3[:, :, sl], k3[:, :, sl], v3[:, :, sl]
                s = jnp.einsum('bld,bmd->blm', qh, kh,
                               preferred_element_type=jnp.float32)
                m = jnp.max(s, axis=-1, keepdims=True)
                e = jnp.exp(s - m)
                p = e / jnp.sum(e, axis=-1, keepdims=True)
                head_outs.append(jnp.einsum('blm,bmd->bld', p, vh,
                                            preferred_element_type=jnp.float32))
            att = jnp.concatenate(head_outs, axis=-1).reshape(batch * seq, d_model)
            att = jnp.dot(att, wo_ref[l],
                          preferred_element_type=jnp.float32) + bo_ref[l]

            # residual #1 (dropout == identity)
            x1 = x + att

            # --- feed-forward on pre-normed x1, residual #2 -------------------
            n = _layernorm(x1, lna_ref[l], lnb_ref[l])
            h1 = jnp.maximum(
                jnp.dot(n, w1_ref[l], preferred_element_type=jnp.float32)
                + b1_ref[l], 0.0)
            ff = jnp.dot(h1, w2_ref[l],
                         preferred_element_type=jnp.float32) + b2_ref[l]
            x = x1 + ff

        # --- fused final Encoder LayerNorm ------------------------------------
        o_ref[...] = _layernorm(x, na_ref[...], nb_ref[...])

    return kernel


# ------------------------------ wrappers ----------------------------------- #

def pack_params(params, d_k):
    """Stack per-layer weights (leading layer axis), pre-transpose to
    (in_features, out_features), fuse Wq/Wk/Wv, fold the 1/sqrt(d_k) scale."""
    scale = 1.0 / math.sqrt(d_k)
    layers = params['layers']
    st = lambda f: jnp.stack([f(p) for p in layers])
    return {
        'wqkv': st(lambda p: jnp.concatenate(
            [p['wq'].T * scale, p['wk'].T, p['wv'].T], axis=1)),   # (NL, D, 3D)
        'bqkv': st(lambda p: jnp.concatenate(
            [p['bq'] * scale, p['bk'], p['bv']], axis=1)),         # (NL, 1, 3D)
        'wo': st(lambda p: p['wo'].T),   'bo': st(lambda p: p['bo']),
        'ln_a': st(lambda p: p['ln_a']), 'ln_b': st(lambda p: p['ln_b']),
        'w1': st(lambda p: p['w1'].T),   'b1': st(lambda p: p['b1']),
        'w2': st(lambda p: p['w2'].T),   'b2': st(lambda p: p['b2']),
        'norm_a': params['norm_a'],      'norm_b': params['norm_b'],
    }


def transformer_sentence_encoder(tokens, anchor_index, params, heads, d_k):
    """Full forward: embed -> fused (N layers + final LayerNorm) kernel -> anchor."""
    x = params['emb_table'][tokens]                  # (B, L, D) glue gather
    B, L, D = x.shape
    n_layers = len(params['layers'])
    pp = pack_params(params, d_k)                    # one-time layout, outside kernel
    x2 = x.reshape(B * L, D)                         # sublane-dense slab

    inputs = (x2,
              pp['wqkv'], pp['bqkv'], pp['wo'], pp['bo'],
              pp['ln_a'], pp['ln_b'],
              pp['w1'], pp['b1'], pp['w2'], pp['b2'],
              pp['norm_a'], pp['norm_b'])

    vmem = pl.BlockSpec(memory_space=pltpu.MemorySpace.VMEM)  # whole array in VMEM
    kernel = make_fused_encoder_kernel(n_layers, B, L, D, heads, d_k)
    out = pl.pallas_call(
        kernel,
        out_shape=jax.ShapeDtypeStruct((B * L, D), x.dtype),
        in_specs=[vmem] * len(inputs),               # built from inputs -> no mismatch
        out_specs=vmem,
        compiler_params=pltpu.CompilerParams(vmem_limit_bytes=64 << 20),
    )(*inputs)

    y = out.reshape(B, L, D)
    # select_anchor: pick the anchor token of every sequence (glue gather)
    return y[jnp.arange(B), anchor_index]            # (B, D)


# ------------------------- pure-JAX reference ------------------------------ #

def ref_encoder_layer(x, p, heads, d_k):
    B, L, D = x.shape
    q = x @ p['wq'].T + p['bq']
    k = x @ p['wk'].T + p['bk']
    v = x @ p['wv'].T + p['bv']
    def split(t):
        return t.reshape(B, L, heads, d_k).transpose(0, 2, 1, 3)
    q, k, v = split(q), split(k), split(v)
    scores = jnp.einsum('bhld,bhmd->bhlm', q, k) / math.sqrt(d_k)
    p_attn = jax.nn.softmax(scores, axis=-1)
    att = jnp.einsum('bhlm,bhmd->bhld', p_attn, v)
    att = att.transpose(0, 2, 1, 3).reshape(B, L, D)
    att = att @ p['wo'].T + p['bo']
    x1 = x + att
    n = _layernorm(x1, p['ln_a'], p['ln_b'])
    ff = jnp.maximum(n @ p['w1'].T + p['b1'], 0.0) @ p['w2'].T + p['b2']
    return x1 + ff


def ref_forward(tokens, anchor_index, params, heads, d_k):
    x = params['emb_table'][tokens]
    for layer_p in params['layers']:
        x = ref_encoder_layer(x, layer_p, heads, d_k)
    x = _layernorm(x, params['norm_a'], params['norm_b'])
    return x[jnp.arange(x.shape[0]), anchor_index]


# --------------------------------- main ------------------------------------ #

def init_params(key, vocab, d_model, d_ff, n_layers):
    keys = jax.random.split(key, 2 + n_layers)
    params = {
        'emb_table': jax.random.normal(keys[0], (vocab, d_model), jnp.float32) * 0.5,
        'norm_a': jnp.ones((1, d_model), jnp.float32),
        'norm_b': jnp.zeros((1, d_model), jnp.float32),
        'layers': [],
    }
    for li in range(n_layers):
        lk = jax.random.split(keys[2 + li], 8)
        s = 1.0 / math.sqrt(d_model)
        sf = 1.0 / math.sqrt(d_ff)
        params['layers'].append({
            'wq': jax.random.uniform(lk[0], (d_model, d_model), jnp.float32, -s, s),
            'bq': jax.random.uniform(lk[1], (1, d_model), jnp.float32, -s, s),
            'wk': jax.random.uniform(lk[2], (d_model, d_model), jnp.float32, -s, s),
            'bk': jnp.zeros((1, d_model), jnp.float32),
            'wv': jax.random.uniform(lk[3], (d_model, d_model), jnp.float32, -s, s),
            'bv': jnp.zeros((1, d_model), jnp.float32),
            'wo': jax.random.uniform(lk[4], (d_model, d_model), jnp.float32, -s, s),
            'bo': jnp.zeros((1, d_model), jnp.float32),
            'ln_a': jnp.ones((1, d_model), jnp.float32),   # sublayer[1].norm.a_2
            'ln_b': jnp.zeros((1, d_model), jnp.float32),  # sublayer[1].norm.b_2
            'w1': jax.random.uniform(lk[5], (d_ff, d_model), jnp.float32, -s, s),
            'b1': jax.random.uniform(lk[6], (1, d_ff), jnp.float32, -s, s),
            'w2': jax.random.uniform(lk[7], (d_model, d_ff), jnp.float32, -sf, sf),
            'b2': jnp.zeros((1, d_model), jnp.float32),
        })
    return params


if __name__ == "__main__":
    B, L, D = 2, 8, 32          # batch, seq length, d_model
    HEADS, D_K = 4, 8           # d_model % heads == 0
    D_FF = 64
    N_LAYERS = 2
    VOCAB = 50

    key = jax.random.PRNGKey(0)
    k_par, k_tok, k_anc = jax.random.split(key, 3)

    params = init_params(k_par, VOCAB, D, D_FF, N_LAYERS)
    tokens = jax.random.randint(k_tok, (B, L), 0, VOCAB)
    anchor_index = jax.random.randint(k_anc, (B,), 0, L)
    # mask exists in the torch inputs dict but is ignored by `attention` — unused here.

    fwd = jax.jit(functools.partial(
        transformer_sentence_encoder, heads=HEADS, d_k=D_K))
    out = fwd(tokens, anchor_index, params)
    out = jax.block_until_ready(out)

    ref = ref_forward(tokens, anchor_index, params, HEADS, D_K)
    np.testing.assert_allclose(np.asarray(out), np.asarray(ref), rtol=1e-4, atol=1e-4)

    assert out.shape == (B, D) and out.dtype == jnp.float32
    print("KERNEL_OK")
</pallas_src>

<mosaic_0001>
module attributes {stable_mosaic.version = 11 : i64} {
  func.func @kernel(%arg0: memref<16x32xf32, #tpu.memory_space<vmem>>, %arg1: memref<2x32x96xf32, #tpu.memory_space<vmem>>, %arg2: memref<2x1x96xf32, #tpu.memory_space<vmem>>, %arg3: memref<2x32x32xf32, #tpu.memory_space<vmem>>, %arg4: memref<2x1x32xf32, #tpu.memory_space<vmem>>, %arg5: memref<2x1x32xf32, #tpu.memory_space<vmem>>, %arg6: memref<2x1x32xf32, #tpu.memory_space<vmem>>, %arg7: memref<2x32x64xf32, #tpu.memory_space<vmem>>, %arg8: memref<2x1x64xf32, #tpu.memory_space<vmem>>, %arg9: memref<2x64x32xf32, #tpu.memory_space<vmem>>, %arg10: memref<2x1x32xf32, #tpu.memory_space<vmem>>, %arg11: memref<1x32xf32, #tpu.memory_space<vmem>>, %arg12: memref<1x32xf32, #tpu.memory_space<vmem>>, %arg13: memref<16x32xf32, #tpu.memory_space<vmem>>) attributes {dimension_semantics = [], scalar_prefetch = 0 : i64, scratch_operands = 0 : i64, tpu.core_type = #tpu.core_type<tc>} {
    %c0 = arith.constant 0 : index
    %c0_0 = arith.constant 0 : index
    %0 = vector.load %arg0[%c0, %c0_0] : memref<16x32xf32, #tpu.memory_space<vmem>>, vector<16x32xf32>
    %c0_1 = arith.constant 0 : index
    %c0_2 = arith.constant 0 : index
    %c0_3 = arith.constant 0 : index
    %1 = vector.load %arg1[%c0_1, %c0_2, %c0_3] : memref<2x32x96xf32, #tpu.memory_space<vmem>>, vector<1x32x96xf32>
    %2 = vector.shape_cast %1 : vector<1x32x96xf32> to vector<32x96xf32>
    %cst = arith.constant dense<0.000000e+00> : vector<16x96xf32>
    %3 = tpu.matmul %0, %2, %cst {dimension_numbers = #tpu.dot_dimension_numbers<[1], [0], [0], [1], [0, 0, 1, 1], [], []>} : vector<16x32xf32>, vector<32x96xf32>, vector<16x96xf32> -> vector<16x96xf32>
    %c0_4 = arith.constant 0 : index
    %c0_5 = arith.constant 0 : index
    %c0_6 = arith.constant 0 : index
    %4 = vector.load %arg2[%c0_4, %c0_5, %c0_6] : memref<2x1x96xf32, #tpu.memory_space<vmem>>, vector<1x1x96xf32>
    %5 = vector.shape_cast %4 : vector<1x1x96xf32> to vector<1x96xf32>
    %6 = vector.broadcast %5 : vector<1x96xf32> to vector<16x96xf32>
    %7 = arith.addf %3, %6 : vector<16x96xf32>
    %8 = vector.extract_strided_slice %7 {offsets = [0, 0], sizes = [16, 32], strides = [1, 1]} : vector<16x96xf32> to vector<16x32xf32>
    %9 = vector.extract_strided_slice %7 {offsets = [0, 32], sizes = [16, 32], strides = [1, 1]} : vector<16x96xf32> to vector<16x32xf32>
    %10 = vector.extract_strided_slice %7 {offsets = [0, 64], sizes = [16, 32], strides = [1, 1]} : vector<16x96xf32> to vector<16x32xf32>
    %11 = vector.shape_cast %8 : vector<16x32xf32> to vector<2x8x32xf32>
    %12 = vector.shape_cast %9 : vector<16x32xf32> to vector<2x8x32xf32>
    %13 = vector.shape_cast %10 : vector<16x32xf32> to vector<2x8x32xf32>
    %14 = vector.extract_strided_slice %11 {offsets = [0, 0, 0], sizes = [2, 8, 8], strides = [1, 1, 1]} : vector<2x8x32xf32> to vector<2x8x8xf32>
    %15 = vector.extract_strided_slice %12 {offsets = [0, 0, 0], sizes = [2, 8, 8], strides = [1, 1, 1]} : vector<2x8x32xf32> to vector<2x8x8xf32>
    %16 = vector.extract_strided_slice %13 {offsets = [0, 0, 0], sizes = [2, 8, 8], strides = [1, 1, 1]} : vector<2x8x32xf32> to vector<2x8x8xf32>
    "tpu.trace_start"() <{level = 10 : i32, message = "bld,bmd->blm"}> : () -> ()
    %cst_7 = arith.constant dense<0.000000e+00> : vector<2x8x8xf32>
    %17 = tpu.matmul %14, %15, %cst_7 {dimension_numbers = #tpu.dot_dimension_numbers<[2], [2], [1], [1], [0, 0, 0, 1, 1, 1], [0], [0]>} : vector<2x8x8xf32>, vector<2x8x8xf32>, vector<2x8x8xf32> -> vector<2x8x8xf32>
    "tpu.trace_stop"() : () -> ()
    %cst_8 = arith.constant dense<0xFF800000> : vector<2x8xf32>
    %18 = vector.multi_reduction <maximumf>, %17, %cst_8 [2] : vector<2x8x8xf32> to vector<2x8xf32>
    %19 = vector.shape_cast %18 : vector<2x8xf32> to vector<2x8x1xf32>
    %20 = vector.broadcast %19 : vector<2x8x1xf32> to vector<2x8x8xf32>
    %21 = arith.subf %17, %20 : vector<2x8x8xf32>
    %22 = math.exp %21 : vector<2x8x8xf32>
    %cst_9 = arith.constant dense<0.000000e+00> : vector<2x8xf32>
    %23 = vector.multi_reduction <add>, %22, %cst_9 [2] : vector<2x8x8xf32> to vector<2x8xf32>
    %24 = vector.shape_cast %23 : vector<2x8xf32> to vector<2x8x1xf32>
    %25 = vector.broadcast %24 : vector<2x8x1xf32> to vector<2x8x8xf32>
    %26 = arith.divf %22, %25 : vector<2x8x8xf32>
    "tpu.trace_start"() <{level = 10 : i32, message = "blm,bmd->bld"}> : () -> ()
    %cst_10 = arith.constant dense<0.000000e+00> : vector<2x8x8xf32>
    %27 = tpu.matmul %26, %16, %cst_10 {dimension_numbers = #tpu.dot_dimension_numbers<[2], [1], [1], [2], [0, 0, 0, 1, 1, 2], [0], [0]>} : vector<2x8x8xf32>, vector<2x8x8xf32>, vector<2x8x8xf32> -> vector<2x8x8xf32>
    "tpu.trace_stop"() : () -> ()
    %28 = vector.extract_strided_slice %11 {offsets = [0, 0, 8], sizes = [2, 8, 8], strides = [1, 1, 1]} : vector<2x8x32xf32> to vector<2x8x8xf32>
    %29 = vector.extract_strided_slice %12 {offsets = [0, 0, 8], sizes = [2, 8, 8], strides = [1, 1, 1]} : vector<2x8x32xf32> to vector<2x8x8xf32>
    %30 = vector.extract_strided_slice %13 {offsets = [0, 0, 8], sizes = [2, 8, 8], strides = [1, 1, 1]} : vector<2x8x32xf32> to vector<2x8x8xf32>
    "tpu.trace_start"() <{level = 10 : i32, message = "bld,bmd->blm"}> : () -> ()
    %cst_11 = arith.constant dense<0.000000e+00> : vector<2x8x8xf32>
    %31 = tpu.matmul %28, %29, %cst_11 {dimension_numbers = #tpu.dot_dimension_numbers<[2], [2], [1], [1], [0, 0, 0, 1, 1, 1], [0], [0]>} : vector<2x8x8xf32>, vector<2x8x8xf32>, vector<2x8x8xf32> -> vector<2x8x8xf32>
    "tpu.trace_stop"() : () -> ()
    %cst_12 = arith.constant dense<0xFF800000> : vector<2x8xf32>
    %32 = vector.multi_reduction <maximumf>, %31, %cst_12 [2] : vector<2x8x8xf32> to vector<2x8xf32>
    %33 = vector.shape_cast %32 : vector<2x8xf32> to vector<2x8x1xf32>
    %34 = vector.broadcast %33 : vector<2x8x1xf32> to vector<2x8x8xf32>
    %35 = arith.subf %31, %34 : vector<2x8x8xf32>
    %36 = math.exp %35 : vector<2x8x8xf32>
    %cst_13 = arith.constant dense<0.000000e+00> : vector<2x8xf32>
    %37 = vector.multi_reduction <add>, %36, %cst_13 [2] : vector<2x8x8xf32> to vector<2x8xf32>
    %38 = vector.shape_cast %37 : vector<2x8xf32> to vector<2x8x1xf32>
    %39 = vector.broadcast %38 : vector<2x8x1xf32> to vector<2x8x8xf32>
    %40 = arith.divf %36, %39 : vector<2x8x8xf32>
    "tpu.trace_start"() <{level = 10 : i32, message = "blm,bmd->bld"}> : () -> ()
    %cst_14 = arith.constant dense<0.000000e+00> : vector<2x8x8xf32>
    %41 = tpu.matmul %40, %30, %cst_14 {dimension_numbers = #tpu.dot_dimension_numbers<[2], [1], [1], [2], [0, 0, 0, 1, 1, 2], [0], [0]>} : vector<2x8x8xf32>, vector<2x8x8xf32>, vector<2x8x8xf32> -> vector<2x8x8xf32>
    "tpu.trace_stop"() : () -> ()
    %42 = vector.extract_strided_slice %11 {offsets = [0, 0, 16], sizes = [2, 8, 8], strides = [1, 1, 1]} : vector<2x8x32xf32> to vector<2x8x8xf32>
    %43 = vector.extract_strided_slice %12 {offsets = [0, 0, 16], sizes = [2, 8, 8], strides = [1, 1, 1]} : vector<2x8x32xf32> to vector<2x8x8xf32>
    %44 = vector.extract_strided_slice %13 {offsets = [0, 0, 16], sizes = [2, 8, 8], strides = [1, 1, 1]} : vector<2x8x32xf32> to vector<2x8x8xf32>
    "tpu.trace_start"() <{level = 10 : i32, message = "bld,bmd->blm"}> : () -> ()
    %cst_15 = arith.constant dense<0.000000e+00> : vector<2x8x8xf32>
    %45 = tpu.matmul %42, %43, %cst_15 {dimension_numbers = #tpu.dot_dimension_numbers<[2], [2], [1], [1], [0, 0, 0, 1, 1, 1], [0], [0]>} : vector<2x8x8xf32>, vector<2x8x8xf32>, vector<2x8x8xf32> -> vector<2x8x8xf32>
    "tpu.trace_stop"() : () -> ()
    %cst_16 = arith.constant dense<0xFF800000> : vector<2x8xf32>
    %46 = vector.multi_reduction <maximumf>, %45, %cst_16 [2] : vector<2x8x8xf32> to vector<2x8xf32>
    %47 = vector.shape_cast %46 : vector<2x8xf32> to vector<2x8x1xf32>
    %48 = vector.broadcast %47 : vector<2x8x1xf32> to vector<2x8x8xf32>
    %49 = arith.subf %45, %48 : vector<2x8x8xf32>
    %50 = math.exp %49 : vector<2x8x8xf32>
    %cst_17 = arith.constant dense<0.000000e+00> : vector<2x8xf32>
    %51 = vector.multi_reduction <add>, %50, %cst_17 [2] : vector<2x8x8xf32> to vector<2x8xf32>
    %52 = vector.shape_cast %51 : vector<2x8xf32> to vector<2x8x1xf32>
    %53 = vector.broadcast %52 : vector<2x8x1xf32> to vector<2x8x8xf32>
    %54 = arith.divf %50, %53 : vector<2x8x8xf32>
    "tpu.trace_start"() <{level = 10 : i32, message = "blm,bmd->bld"}> : () -> ()
    %cst_18 = arith.constant dense<0.000000e+00> : vector<2x8x8xf32>
    %55 = tpu.matmul %54, %44, %cst_18 {dimension_numbers = #tpu.dot_dimension_numbers<[2], [1], [1], [2], [0, 0, 0, 1, 1, 2], [0], [0]>} : vector<2x8x8xf32>, vector<2x8x8xf32>, vector<2x8x8xf32> -> vector<2x8x8xf32>
    "tpu.trace_stop"() : () -> ()
    %56 = vector.extract_strided_slice %11 {offsets = [0, 0, 24], sizes = [2, 8, 8], strides = [1, 1, 1]} : vector<2x8x32xf32> to vector<2x8x8xf32>
    %57 = vector.extract_strided_slice %12 {offsets = [0, 0, 24], sizes = [2, 8, 8], strides = [1, 1, 1]} : vector<2x8x32xf32> to vector<2x8x8xf32>
    %58 = vector.extract_strided_slice %13 {offsets = [0, 0, 24], sizes = [2, 8, 8], strides = [1, 1, 1]} : vector<2x8x32xf32> to vector<2x8x8xf32>
    "tpu.trace_start"() <{level = 10 : i32, message = "bld,bmd->blm"}> : () -> ()
    %cst_19 = arith.constant dense<0.000000e+00> : vector<2x8x8xf32>
    %59 = tpu.matmul %56, %57, %cst_19 {dimension_numbers = #tpu.dot_dimension_numbers<[2], [2], [1], [1], [0, 0, 0, 1, 1, 1], [0], [0]>} : vector<2x8x8xf32>, vector<2x8x8xf32>, vector<2x8x8xf32> -> vector<2x8x8xf32>
    "tpu.trace_stop"() : () -> ()
    %cst_20 = arith.constant dense<0xFF800000> : vector<2x8xf32>
    %60 = vector.multi_reduction <maximumf>, %59, %cst_20 [2] : vector<2x8x8xf32> to vector<2x8xf32>
    %61 = vector.shape_cast %60 : vector<2x8xf32> to vector<2x8x1xf32>
    %62 = vector.broadcast %61 : vector<2x8x1xf32> to vector<2x8x8xf32>
    %63 = arith.subf %59, %62 : vector<2x8x8xf32>
    %64 = math.exp %63 : vector<2x8x8xf32>
    %cst_21 = arith.constant dense<0.000000e+00> : vector<2x8xf32>
    %65 = vector.multi_reduction <add>, %64, %cst_21 [2] : vector<2x8x8xf32> to vector<2x8xf32>
    %66 = vector.shape_cast %65 : vector<2x8xf32> to vector<2x8x1xf32>
    %67 = vector.broadcast %66 : vector<2x8x1xf32> to vector<2x8x8xf32>
    %68 = arith.divf %64, %67 : vector<2x8x8xf32>
    "tpu.trace_start"() <{level = 10 : i32, message = "blm,bmd->bld"}> : () -> ()
    %cst_22 = arith.constant dense<0.000000e+00> : vector<2x8x8xf32>
    %69 = tpu.matmul %68, %58, %cst_22 {dimension_numbers = #tpu.dot_dimension_numbers<[2], [1], [1], [2], [0, 0, 0, 1, 1, 2], [0], [0]>} : vector<2x8x8xf32>, vector<2x8x8xf32>, vector<2x8x8xf32> -> vector<2x8x8xf32>
    "tpu.trace_stop"() : () -> ()
    %70 = tpu.concatenate %27, %41, %55, %69 in 2 : vector<2x8x8xf32>, vector<2x8x8xf32>, vector<2x8x8xf32>, vector<2x8x8xf32> -> vector<2x8x32xf32>
    %71 = vector.shape_cast %70 : vector<2x8x32xf32> to vector<16x32xf32>
    %c0_23 = arith.constant 0 : index
    %c0_24 = arith.constant 0 : index
    %c0_25 = arith.constant 0 : index
    %72 = vector.load %arg3[%c0_23, %c0_24, %c0_25] : memref<2x32x32xf32, #tpu.memory_space<vmem>>, vector<1x32x32xf32>
    %73 = vector.shape_cast %72 : vector<1x32x32xf32> to vector<32x32xf32>
    %cst_26 = arith.constant dense<0.000000e+00> : vector<16x32xf32>
    %74 = tpu.matmul %71, %73, %cst_26 {dimension_numbers = #tpu.dot_dimension_numbers<[1], [0], [0], [1], [0, 0, 1, 1], [], []>} : vector<16x32xf32>, vector<32x32xf32>, vector<16x32xf32> -> vector<16x32xf32>
    %c0_27 = arith.constant 0 : index
    %c0_28 = arith.constant 0 : index
    %c0_29 = arith.constant 0 : index
    %75 = vector.load %arg4[%c0_27, %c0_28, %c0_29] : memref<2x1x32xf32, #tpu.memory_space<vmem>>, vector<1x1x32xf32>
    %76 = vector.shape_cast %75 : vector<1x1x32xf32> to vector<1x32xf32>
    %77 = vector.broadcast %76 : vector<1x32xf32> to vector<16x32xf32>
    %78 = arith.addf %74, %77 : vector<16x32xf32>
    %79 = arith.addf %0, %78 : vector<16x32xf32>
    %c0_30 = arith.constant 0 : index
    %c0_31 = arith.constant 0 : index
    %c0_32 = arith.constant 0 : index
    %80 = vector.load %arg5[%c0_30, %c0_31, %c0_32] : memref<2x1x32xf32, #tpu.memory_space<vmem>>, vector<1x1x32xf32>
    %81 = vector.shape_cast %80 : vector<1x1x32xf32> to vector<1x32xf32>
    %c0_33 = arith.constant 0 : index
    %c0_34 = arith.constant 0 : index
    %c0_35 = arith.constant 0 : index
    %82 = vector.load %arg6[%c0_33, %c0_34, %c0_35] : memref<2x1x32xf32, #tpu.memory_space<vmem>>, vector<1x1x32xf32>
    %83 = vector.shape_cast %82 : vector<1x1x32xf32> to vector<1x32xf32>
    %cst_36 = arith.constant dense<0.000000e+00> : vector<16xf32>
    %84 = vector.multi_reduction <add>, %79, %cst_36 [1] : vector<16x32xf32> to vector<16xf32>
    %85 = vector.shape_cast %84 : vector<16xf32> to vector<16x1xf32>
    %cst_37 = arith.constant 3.200000e+01 : f32
    %86 = vector.broadcast %cst_37 : f32 to vector<16x1xf32>
    %87 = arith.divf %85, %86 : vector<16x1xf32>
    %88 = vector.broadcast %87 : vector<16x1xf32> to vector<16x32xf32>
    %89 = arith.subf %79, %88 : vector<16x32xf32>
    %90 = arith.mulf %89, %89 : vector<16x32xf32>
    %cst_38 = arith.constant dense<0.000000e+00> : vector<16xf32>
    %91 = vector.multi_reduction <add>, %90, %cst_38 [1] : vector<16x32xf32> to vector<16xf32>
    %92 = vector.shape_cast %91 : vector<16xf32> to vector<16x1xf32>
    %cst_39 = arith.constant 3.100000e+01 : f32
    %93 = vector.broadcast %cst_39 : f32 to vector<16x1xf32>
    %94 = arith.divf %92, %93 : vector<16x1xf32>
    %95 = math.sqrt %94 : vector<16x1xf32>
    %96 = vector.broadcast %87 : vector<16x1xf32> to vector<16x32xf32>
    %97 = arith.subf %79, %96 : vector<16x32xf32>
    %98 = vector.broadcast %81 : vector<1x32xf32> to vector<16x32xf32>
    %99 = arith.mulf %98, %97 : vector<16x32xf32>
    %cst_40 = arith.constant 9.99999997E-7 : f32
    %100 = vector.broadcast %cst_40 : f32 to vector<16x1xf32>
    %101 = arith.addf %95, %100 : vector<16x1xf32>
    %102 = vector.broadcast %101 : vector<16x1xf32> to vector<16x32xf32>
    %103 = arith.divf %99, %102 : vector<16x32xf32>
    %104 = vector.broadcast %83 : vector<1x32xf32> to vector<16x32xf32>
    %105 = arith.addf %103, %104 : vector<16x32xf32>
    %c0_41 = arith.constant 0 : index
    %c0_42 = arith.constant 0 : index
    %c0_43 = arith.constant 0 : index
    %106 = vector.load %arg7[%c0_41, %c0_42, %c0_43] : memref<2x32x64xf32, #tpu.memory_space<vmem>>, vector<1x32x64xf32>
    %107 = vector.shape_cast %106 : vector<1x32x64xf32> to vector<32x64xf32>
    %cst_44 = arith.constant dense<0.000000e+00> : vector<16x64xf32>
    %108 = tpu.matmul %105, %107, %cst_44 {dimension_numbers = #tpu.dot_dimension_numbers<[1], [0], [0], [1], [0, 0, 1, 1], [], []>} : vector<16x32xf32>, vector<32x64xf32>, vector<16x64xf32> -> vector<16x64xf32>
    %c0_45 = arith.constant 0 : index
    %c0_46 = arith.constant 0 : index
    %c0_47 = arith.constant 0 : index
    %109 = vector.load %arg8[%c0_45, %c0_46, %c0_47] : memref<2x1x64xf32, #tpu.memory_space<vmem>>, vector<1x1x64xf32>
    %110 = vector.shape_cast %109 : vector<1x1x64xf32> to vector<1x64xf32>
    %111 = vector.broadcast %110 : vector<1x64xf32> to vector<16x64xf32>
    %112 = arith.addf %108, %111 : vector<16x64xf32>
    %cst_48 = arith.constant 0.000000e+00 : f32
    %113 = vector.broadcast %cst_48 : f32 to vector<16x64xf32>
    %114 = arith.maximumf %112, %113 : vector<16x64xf32>
    %c0_49 = arith.constant 0 : index
    %c0_50 = arith.constant 0 : index
    %c0_51 = arith.constant 0 : index
    %115 = vector.load %arg9[%c0_49, %c0_50, %c0_51] : memref<2x64x32xf32, #tpu.memory_space<vmem>>, vector<1x64x32xf32>
    %116 = vector.shape_cast %115 : vector<1x64x32xf32> to vector<64x32xf32>
    %cst_52 = arith.constant dense<0.000000e+00> : vector<16x32xf32>
    %117 = tpu.matmul %114, %116, %cst_52 {dimension_numbers = #tpu.dot_dimension_numbers<[1], [0], [0], [1], [0, 0, 1, 1], [], []>} : vector<16x64xf32>, vector<64x32xf32>, vector<16x32xf32> -> vector<16x32xf32>
    %c0_53 = arith.constant 0 : index
    %c0_54 = arith.constant 0 : index
    %c0_55 = arith.constant 0 : index
    %118 = vector.load %arg10[%c0_53, %c0_54, %c0_55] : memref<2x1x32xf32, #tpu.memory_space<vmem>>, vector<1x1x32xf32>
    %119 = vector.shape_cast %118 : vector<1x1x32xf32> to vector<1x32xf32>
    %120 = vector.broadcast %119 : vector<1x32xf32> to vector<16x32xf32>
    %121 = arith.addf %117, %120 : vector<16x32xf32>
    %122 = arith.addf %79, %121 : vector<16x32xf32>
    %c1 = arith.constant 1 : index
    %c0_56 = arith.constant 0 : index
    %c0_57 = arith.constant 0 : index
    %123 = vector.load %arg1[%c1, %c0_56, %c0_57] : memref<2x32x96xf32, #tpu.memory_space<vmem>>, vector<1x32x96xf32>
    %124 = vector.shape_cast %123 : vector<1x32x96xf32> to vector<32x96xf32>
    %cst_58 = arith.constant dense<0.000000e+00> : vector<16x96xf32>
    %125 = tpu.matmul %122, %124, %cst_58 {dimension_numbers = #tpu.dot_dimension_numbers<[1], [0], [0], [1], [0, 0, 1, 1], [], []>} : vector<16x32xf32>, vector<32x96xf32>, vector<16x96xf32> -> vector<16x96xf32>
    %c1_59 = arith.constant 1 : index
    %c0_60 = arith.constant 0 : index
    %c0_61 = arith.constant 0 : index
    %126 = vector.load %arg2[%c1_59, %c0_60, %c0_61] : memref<2x1x96xf32, #tpu.memory_space<vmem>>, vector<1x1x96xf32>
    %127 = vector.shape_cast %126 : vector<1x1x96xf32> to vector<1x96xf32>
    %128 = vector.broadcast %127 : vector<1x96xf32> to vector<16x96xf32>
    %129 = arith.addf %125, %128 : vector<16x96xf32>
    %130 = vector.extract_strided_slice %129 {offsets = [0, 0], sizes = [16, 32], strides = [1, 1]} : vector<16x96xf32> to vector<16x32xf32>
    %131 = vector.extract_strided_slice %129 {offsets = [0, 32], sizes = [16, 32], strides = [1, 1]} : vector<16x96xf32> to vector<16x32xf32>
    %132 = vector.extract_strided_slice %129 {offsets = [0, 64], sizes = [16, 32], strides = [1, 1]} : vector<16x96xf32> to vector<16x32xf32>
    %133 = vector.shape_cast %130 : vector<16x32xf32> to vector<2x8x32xf32>
    %134 = vector.shape_cast %131 : vector<16x32xf32> to vector<2x8x32xf32>
    %135 = vector.shape_cast %132 : vector<16x32xf32> to vector<2x8x32xf32>
    %136 = vector.extract_strided_slice %133 {offsets = [0, 0, 0], sizes = [2, 8, 8], strides = [1, 1, 1]} : vector<2x8x32xf32> to vector<2x8x8xf32>
    %137 = vector.extract_strided_slice %134 {offsets = [0, 0, 0], sizes = [2, 8, 8], strides = [1, 1, 1]} : vector<2x8x32xf32> to vector<2x8x8xf32>
    %138 = vector.extract_strided_slice %135 {offsets = [0, 0, 0], sizes = [2, 8, 8], strides = [1, 1, 1]} : vector<2x8x32xf32> to vector<2x8x8xf32>
    "tpu.trace_start"() <{level = 10 : i32, message = "bld,bmd->blm"}> : () -> ()
    %cst_62 = arith.constant dense<0.000000e+00> : vector<2x8x8xf32>
    %139 = tpu.matmul %136, %137, %cst_62 {dimension_numbers = #tpu.dot_dimension_numbers<[2], [2], [1], [1], [0, 0, 0, 1, 1, 1], [0], [0]>} : vector<2x8x8xf32>, vector<2x8x8xf32>, vector<2x8x8xf32> -> vector<2x8x8xf32>
    "tpu.trace_stop"() : () -> ()
    %cst_63 = arith.constant dense<0xFF800000> : vector<2x8xf32>
    %140 = vector.multi_reduction <maximumf>, %139, %cst_63 [2] : vector<2x8x8xf32> to vector<2x8xf32>
    %141 = vector.shape_cast %140 : vector<2x8xf32> to vector<2x8x1xf32>
    %142 = vector.broadcast %141 : vector<2x8x1xf32> to vector<2x8x8xf32>
    %143 = arith.subf %139, %142 : vector<2x8x8xf32>
    %144 = math.exp %143 : vector<2x8x8xf32>
    %cst_64 = arith.constant dense<0.000000e+00> : vector<2x8xf32>
    %145 = vector.multi_reduction <add>, %144, %cst_64 [2] : vector<2x8x8xf32> to vector<2x8xf32>
    %146 = vector.shape_cast %145 : vector<2x8xf32> to vector<2x8x1xf32>
    %147 = vector.broadcast %146 : vector<2x8x1xf32> to vector<2x8x8xf32>
    %148 = arith.divf %144, %147 : vector<2x8x8xf32>
    "tpu.trace_start"() <{level = 10 : i32, message = "blm,bmd->bld"}> : () -> ()
    %cst_65 = arith.constant dense<0.000000e+00> : vector<2x8x8xf32>
    %149 = tpu.matmul %148, %138, %cst_65 {dimension_numbers = #tpu.dot_dimension_numbers<[2], [1], [1], [2], [0, 0, 0, 1, 1, 2], [0], [0]>} : vector<2x8x8xf32>, vector<2x8x8xf32>, vector<2x8x8xf32> -> vector<2x8x8xf32>
    "tpu.trace_stop"() : () -> ()
    %150 = vector.extract_strided_slice %133 {offsets = [0, 0, 8], sizes = [2, 8, 8], strides = [1, 1, 1]} : vector<2x8x32xf32> to vector<2x8x8xf32>
    %151 = vector.extract_strided_slice %134 {offsets = [0, 0, 8], sizes = [2, 8, 8], strides = [1, 1, 1]} : vector<2x8x32xf32> to vector<2x8x8xf32>
    %152 = vector.extract_strided_slice %135 {offsets = [0, 0, 8], sizes = [2, 8, 8], strides = [1, 1, 1]} : vector<2x8x32xf32> to vector<2x8x8xf32>
    "tpu.trace_start"() <{level = 10 : i32, message = "bld,bmd->blm"}> : () -> ()
    %cst_66 = arith.constant dense<0.000000e+00> : vector<2x8x8xf32>
    %153 = tpu.matmul %150, %151, %cst_66 {dimension_numbers = #tpu.dot_dimension_numbers<[2], [2], [1], [1], [0, 0, 0, 1, 1, 1], [0], [0]>} : vector<2x8x8xf32>, vector<2x8x8xf32>, vector<2x8x8xf32> -> vector<2x8x8xf32>
    "tpu.trace_stop"() : () -> ()
    %cst_67 = arith.constant dense<0xFF800000> : vector<2x8xf32>
    %154 = vector.multi_reduction <maximumf>, %153, %cst_67 [2] : vector<2x8x8xf32> to vector<2x8xf32>
    %155 = vector.shape_cast %154 : vector<2x8xf32> to vector<2x8x1xf32>
    %156 = vector.broadcast %155 : vector<2x8x1xf32> to vector<2x8x8xf32>
    %157 = arith.subf %153, %156 : vector<2x8x8xf32>
    %158 = math.exp %157 : vector<2x8x8xf32>
    %cst_68 = arith.constant dense<0.000000e+00> : vector<2x8xf32>
    %159 = vector.multi_reduction <add>, %158, %cst_68 [2] : vector<2x8x8xf32> to vector<2x8xf32>
    %160 = vector.shape_cast %159 : vector<2x8xf32> to vector<2x8x1xf32>
    %161 = vector.broadcast %160 : vector<2x8x1xf32> to vector<2x8x8xf32>
    %162 = arith.divf %158, %161 : vector<2x8x8xf32>
    "tpu.trace_start"() <{level = 10 : i32, message = "blm,bmd->bld"}> : () -> ()
    %cst_69 = arith.constant dense<0.000000e+00> : vector<2x8x8xf32>
    %163 = tpu.matmul %162, %152, %cst_69 {dimension_numbers = #tpu.dot_dimension_numbers<[2], [1], [1], [2], [0, 0, 0, 1, 1, 2], [0], [0]>} : vector<2x8x8xf32>, vector<2x8x8xf32>, vector<2x8x8xf32> -> vector<2x8x8xf32>
    "tpu.trace_stop"() : () -> ()
    %164 = vector.extract_strided_slice %133 {offsets = [0, 0, 16], sizes = [2, 8, 8], strides = [1, 1, 1]} : vector<2x8x32xf32> to vector<2x8x8xf32>
    %165 = vector.extract_strided_slice %134 {offsets = [0, 0, 16], sizes = [2, 8, 8], strides = [1, 1, 1]} : vector<2x8x32xf32> to vector<2x8x8xf32>
    %166 = vector.extract_strided_slice %135 {offsets = [0, 0, 16], sizes = [2, 8, 8], strides = [1, 1, 1]} : vector<2x8x32xf32> to vector<2x8x8xf32>
    "tpu.trace_start"() <{level = 10 : i32, message = "bld,bmd->blm"}> : () -> ()
    %cst_70 = arith.constant dense<0.000000e+00> : vector<2x8x8xf32>
    %167 = tpu.matmul %164, %165, %cst_70 {dimension_numbers = #tpu.dot_dimension_numbers<[2], [2], [1], [1], [0, 0, 0, 1, 1, 1], [0], [0]>} : vector<2x8x8xf32>, vector<2x8x8xf32>, vector<2x8x8xf32> -> vector<2x8x8xf32>
    "tpu.trace_stop"() : () -> ()
    %cst_71 = arith.constant dense<0xFF800000> : vector<2x8xf32>
    %168 = vector.multi_reduction <maximumf>, %167, %cst_71 [2] : vector<2x8x8xf32> to vector<2x8xf32>
    %169 = vector.shape_cast %168 : vector<2x8xf32> to vector<2x8x1xf32>
    %170 = vector.broadcast %169 : vector<2x8x1xf32> to vector<2x8x8xf32>
    %171 = arith.subf %167, %170 : vector<2x8x8xf32>
    %172 = math.exp %171 : vector<2x8x8xf32>
    %cst_72 = arith.constant dense<0.000000e+00> : vector<2x8xf32>
    %173 = vector.multi_reduction <add>, %172, %cst_72 [2] : vector<2x8x8xf32> to vector<2x8xf32>
    %174 = vector.shape_cast %173 : vector<2x8xf32> to vector<2x8x1xf32>
    %175 = vector.broadcast %174 : vector<2x8x1xf32> to vector<2x8x8xf32>
    %176 = arith.divf %172, %175 : vector<2x8x8xf32>
    "tpu.trace_start"() <{level = 10 : i32, message = "blm,bmd->bld"}> : () -> ()
    %cst_73 = arith.constant dense<0.000000e+00> : vector<2x8x8xf32>
    %177 = tpu.matmul %176, %166, %cst_73 {dimension_numbers = #tpu.dot_dimension_numbers<[2], [1], [1], [2], [0, 0, 0, 1, 1, 2], [0], [0]>} : vector<2x8x8xf32>, vector<2x8x8xf32>, vector<2x8x8xf32> -> vector<2x8x8xf32>
    "tpu.trace_stop"() : () -> ()
    %178 = vector.extract_strided_slice %133 {offsets = [0, 0, 24], sizes = [2, 8, 8], strides = [1, 1, 1]} : vector<2x8x32xf32> to vector<2x8x8xf32>
    %179 = vector.extract_strided_slice %134 {offsets = [0, 0, 24], sizes = [2, 8, 8], strides = [1, 1, 1]} : vector<2x8x32xf32> to vector<2x8x8xf32>
    %180 = vector.extract_strided_slice %135 {offsets = [0, 0, 24], sizes = [2, 8, 8], strides = [1, 1, 1]} : vector<2x8x32xf32> to vector<2x8x8xf32>
    "tpu.trace_start"() <{level = 10 : i32, message = "bld,bmd->blm"}> : () -> ()
    %cst_74 = arith.constant dense<0.000000e+00> : vector<2x8x8xf32>
    %181 = tpu.matmul %178, %179, %cst_74 {dimension_numbers = #tpu.dot_dimension_numbers<[2], [2], [1], [1], [0, 0, 0, 1, 1, 1], [0], [0]>} : vector<2x8x8xf32>, vector<2x8x8xf32>, vector<2x8x8xf32> -> vector<2x8x8xf32>
    "tpu.trace_stop"() : () -> ()
    %cst_75 = arith.constant dense<0xFF800000> : vector<2x8xf32>
    %182 = vector.multi_reduction <maximumf>, %181, %cst_75 [2] : vector<2x8x8xf32> to vector<2x8xf32>
    %183 = vector.shape_cast %182 : vector<2x8xf32> to vector<2x8x1xf32>
    %184 = vector.broadcast %183 : vector<2x8x1xf32> to vector<2x8x8xf32>
    %185 = arith.subf %181, %184 : vector<2x8x8xf32>
    %186 = math.exp %185 : vector<2x8x8xf32>
    %cst_76 = arith.constant dense<0.000000e+00> : vector<2x8xf32>
    %187 = vector.multi_reduction <add>, %186, %cst_76 [2] : vector<2x8x8xf32> to vector<2x8xf32>
    %188 = vector.shape_cast %187 : vector<2x8xf32> to vector<2x8x1xf32>
    %189 = vector.broadcast %188 : vector<2x8x1xf32> to vector<2x8x8xf32>
    %190 = arith.divf %186, %189 : vector<2x8x8xf32>
    "tpu.trace_start"() <{level = 10 : i32, message = "blm,bmd->bld"}> : () -> ()
    %cst_77 = arith.constant dense<0.000000e+00> : vector<2x8x8xf32>
    %191 = tpu.matmul %190, %180, %cst_77 {dimension_numbers = #tpu.dot_dimension_numbers<[2], [1], [1], [2], [0, 0, 0, 1, 1, 2], [0], [0]>} : vector<2x8x8xf32>, vector<2x8x8xf32>, vector<2x8x8xf32> -> vector<2x8x8xf32>
    "tpu.trace_stop"() : () -> ()
    %192 = tpu.concatenate %149, %163, %177, %191 in 2 : vector<2x8x8xf32>, vector<2x8x8xf32>, vector<2x8x8xf32>, vector<2x8x8xf32> -> vector<2x8x32xf32>
    %193 = vector.shape_cast %192 : vector<2x8x32xf32> to vector<16x32xf32>
    %c1_78 = arith.constant 1 : index
    %c0_79 = arith.constant 0 : index
    %c0_80 = arith.constant 0 : index
    %194 = vector.load %arg3[%c1_78, %c0_79, %c0_80] : memref<2x32x32xf32, #tpu.memory_space<vmem>>, vector<1x32x32xf32>
    %195 = vector.shape_cast %194 : vector<1x32x32xf32> to vector<32x32xf32>
    %cst_81 = arith.constant dense<0.000000e+00> : vector<16x32xf32>
    %196 = tpu.matmul %193, %195, %cst_81 {dimension_numbers = #tpu.dot_dimension_numbers<[1], [0], [0], [1], [0, 0, 1, 1], [], []>} : vector<16x32xf32>, vector<32x32xf32>, vector<16x32xf32> -> vector<16x32xf32>
    %c1_82 = arith.constant 1 : index
    %c0_83 = arith.constant 0 : index
    %c0_84 = arith.constant 0 : index
    %197 = vector.load %arg4[%c1_82, %c0_83, %c0_84] : memref<2x1x32xf32, #tpu.memory_space<vmem>>, vector<1x1x32xf32>
    %198 = vector.shape_cast %197 : vector<1x1x32xf32> to vector<1x32xf32>
    %199 = vector.broadcast %198 : vector<1x32xf32> to vector<16x32xf32>
    %200 = arith.addf %196, %199 : vector<16x32xf32>
    %201 = arith.addf %122, %200 : vector<16x32xf32>
    %c1_85 = arith.constant 1 : index
    %c0_86 = arith.constant 0 : index
    %c0_87 = arith.constant 0 : index
    %202 = vector.load %arg5[%c1_85, %c0_86, %c0_87] : memref<2x1x32xf32, #tpu.memory_space<vmem>>, vector<1x1x32xf32>
    %203 = vector.shape_cast %202 : vector<1x1x32xf32> to vector<1x32xf32>
    %c1_88 = arith.constant 1 : index
    %c0_89 = arith.constant 0 : index
    %c0_90 = arith.constant 0 : index
    %204 = vector.load %arg6[%c1_88, %c0_89, %c0_90] : memref<2x1x32xf32, #tpu.memory_space<vmem>>, vector<1x1x32xf32>
    %205 = vector.shape_cast %204 : vector<1x1x32xf32> to vector<1x32xf32>
    %cst_91 = arith.constant dense<0.000000e+00> : vector<16xf32>
    %206 = vector.multi_reduction <add>, %201, %cst_91 [1] : vector<16x32xf32> to vector<16xf32>
    %207 = vector.shape_cast %206 : vector<16xf32> to vector<16x1xf32>
    %cst_92 = arith.constant 3.200000e+01 : f32
    %208 = vector.broadcast %cst_92 : f32 to vector<16x1xf32>
    %209 = arith.divf %207, %208 : vector<16x1xf32>
    %210 = vector.broadcast %209 : vector<16x1xf32> to vector<16x32xf32>
    %211 = arith.subf %201, %210 : vector<16x32xf32>
    %212 = arith.mulf %211, %211 : vector<16x32xf32>
    %cst_93 = arith.constant dense<0.000000e+00> : vector<16xf32>
    %213 = vector.multi_reduction <add>, %212, %cst_93 [1] : vector<16x32xf32> to vector<16xf32>
    %214 = vector.shape_cast %213 : vector<16xf32> to vector<16x1xf32>
    %cst_94 = arith.constant 3.100000e+01 : f32
    %215 = vector.broadcast %cst_94 : f32 to vector<16x1xf32>
    %216 = arith.divf %214, %215 : vector<16x1xf32>
    %217 = math.sqrt %216 : vector<16x1xf32>
    %218 = vector.broadcast %209 : vector<16x1xf32> to vector<16x32xf32>
    %219 = arith.subf %201, %218 : vector<16x32xf32>
    %220 = vector.broadcast %203 : vector<1x32xf32> to vector<16x32xf32>
    %221 = arith.mulf %220, %219 : vector<16x32xf32>
    %cst_95 = arith.constant 9.99999997E-7 : f32
    %222 = vector.broadcast %cst_95 : f32 to vector<16x1xf32>
    %223 = arith.addf %217, %222 : vector<16x1xf32>
    %224 = vector.broadcast %223 : vector<16x1xf32> to vector<16x32xf32>
    %225 = arith.divf %221, %224 : vector<16x32xf32>
    %226 = vector.broadcast %205 : vector<1x32xf32> to vector<16x32xf32>
    %227 = arith.addf %225, %226 : vector<16x32xf32>
    %c1_96 = arith.constant 1 : index
    %c0_97 = arith.constant 0 : index
    %c0_98 = arith.constant 0 : index
    %228 = vector.load %arg7[%c1_96, %c0_97, %c0_98] : memref<2x32x64xf32, #tpu.memory_space<vmem>>, vector<1x32x64xf32>
    %229 = vector.shape_cast %228 : vector<1x32x64xf32> to vector<32x64xf32>
    %cst_99 = arith.constant dense<0.000000e+00> : vector<16x64xf32>
    %230 = tpu.matmul %227, %229, %cst_99 {dimension_numbers = #tpu.dot_dimension_numbers<[1], [0], [0], [1], [0, 0, 1, 1], [], []>} : vector<16x32xf32>, vector<32x64xf32>, vector<16x64xf32> -> vector<16x64xf32>
    %c1_100 = arith.constant 1 : index
    %c0_101 = arith.constant 0 : index
    %c0_102 = arith.constant 0 : index
    %231 = vector.load %arg8[%c1_100, %c0_101, %c0_102] : memref<2x1x64xf32, #tpu.memory_space<vmem>>, vector<1x1x64xf32>
    %232 = vector.shape_cast %231 : vector<1x1x64xf32> to vector<1x64xf32>
    %233 = vector.broadcast %232 : vector<1x64xf32> to vector<16x64xf32>
    %234 = arith.addf %230, %233 : vector<16x64xf32>
    %cst_103 = arith.constant 0.000000e+00 : f32
    %235 = vector.broadcast %cst_103 : f32 to vector<16x64xf32>
    %236 = arith.maximumf %234, %235 : vector<16x64xf32>
    %c1_104 = arith.constant 1 : index
    %c0_105 = arith.constant 0 : index
    %c0_106 = arith.constant 0 : index
    %237 = vector.load %arg9[%c1_104, %c0_105, %c0_106] : memref<2x64x32xf32, #tpu.memory_space<vmem>>, vector<1x64x32xf32>
    %238 = vector.shape_cast %237 : vector<1x64x32xf32> to vector<64x32xf32>
    %cst_107 = arith.constant dense<0.000000e+00> : vector<16x32xf32>
    %239 = tpu.matmul %236, %238, %cst_107 {dimension_numbers = #tpu.dot_dimension_numbers<[1], [0], [0], [1], [0, 0, 1, 1], [], []>} : vector<16x64xf32>, vector<64x32xf32>, vector<16x32xf32> -> vector<16x32xf32>
    %c1_108 = arith.constant 1 : index
    %c0_109 = arith.constant 0 : index
    %c0_110 = arith.constant 0 : index
    %240 = vector.load %arg10[%c1_108, %c0_109, %c0_110] : memref<2x1x32xf32, #tpu.memory_space<vmem>>, vector<1x1x32xf32>
    %241 = vector.shape_cast %240 : vector<1x1x32xf32> to vector<1x32xf32>
    %242 = vector.broadcast %241 : vector<1x32xf32> to vector<16x32xf32>
    %243 = arith.addf %239, %242 : vector<16x32xf32>
    %244 = arith.addf %201, %243 : vector<16x32xf32>
    %c0_111 = arith.constant 0 : index
    %c0_112 = arith.constant 0 : index
    %245 = vector.load %arg11[%c0_111, %c0_112] : memref<1x32xf32, #tpu.memory_space<vmem>>, vector<1x32xf32>
    %c0_113 = arith.constant 0 : index
    %c0_114 = arith.constant 0 : index
    %246 = vector.load %arg12[%c0_113, %c0_114] : memref<1x32xf32, #tpu.memory_space<vmem>>, vector<1x32xf32>
    %cst_115 = arith.constant dense<0.000000e+00> : vector<16xf32>
    %247 = vector.multi_reduction <add>, %244, %cst_115 [1] : vector<16x32xf32> to vector<16xf32>
    %248 = vector.shape_cast %247 : vector<16xf32> to vector<16x1xf32>
    %cst_116 = arith.constant 3.200000e+01 : f32
    %249 = vector.broadcast %cst_116 : f32 to vector<16x1xf32>
    %250 = arith.divf %248, %249 : vector<16x1xf32>
    %251 = vector.broadcast %250 : vector<16x1xf32> to vector<16x32xf32>
    %252 = arith.subf %244, %251 : vector<16x32xf32>
    %253 = arith.mulf %252, %252 : vector<16x32xf32>
    %cst_117 = arith.constant dense<0.000000e+00> : vector<16xf32>
    %254 = vector.multi_reduction <add>, %253, %cst_117 [1] : vector<16x32xf32> to vector<16xf32>
    %255 = vector.shape_cast %254 : vector<16xf32> to vector<16x1xf32>
    %cst_118 = arith.constant 3.100000e+01 : f32
    %256 = vector.broadcast %cst_118 : f32 to vector<16x1xf32>
    %257 = arith.divf %255, %256 : vector<16x1xf32>
    %258 = math.sqrt %257 : vector<16x1xf32>
    %259 = vector.broadcast %250 : vector<16x1xf32> to vector<16x32xf32>
    %260 = arith.subf %244, %259 : vector<16x32xf32>
    %261 = vector.broadcast %245 : vector<1x32xf32> to vector<16x32xf32>
    %262 = arith.mulf %261, %260 : vector<16x32xf32>
    %cst_119 = arith.constant 9.99999997E-7 : f32
    %263 = vector.broadcast %cst_119 : f32 to vector<16x1xf32>
    %264 = arith.addf %258, %263 : vector<16x1xf32>
    %265 = vector.broadcast %264 : vector<16x1xf32> to vector<16x32xf32>
    %266 = arith.divf %262, %265 : vector<16x32xf32>
    %267 = vector.broadcast %246 : vector<1x32xf32> to vector<16x32xf32>
    %268 = arith.addf %266, %267 : vector<16x32xf32>
    %c0_120 = arith.constant 0 : index
    %c0_121 = arith.constant 0 : index
    %269 = vector.load %arg13[%c0_120, %c0_121] : memref<16x32xf32, #tpu.memory_space<vmem>>, vector<16x32xf32>
    tpu.vector_store %arg13[%c0_120, %c0_121], %268 {strides = array<i32>} : memref<16x32xf32, #tpu.memory_space<vmem>>, vector<16x32xf32>,
    return
  }
}

</mosaic_0001>

<bundles_post_ra>
// kernel: transformer_sentence_encoder.1
= control target key start
LH: loop header
LB: loop body
LE: loop exit
PB: predicated region body
PF: predicated region fallthrough
CT: control target
= control target key end

     0   :  { %18 = vsyncpa [#allocation3], 0  ;;  %s5604_s0 = inlined_call_operand.hbm [shape: f32[16,32], index: 0, kind: input, shape index: {}]   ;;  %s5605_s1 = inlined_call_operand.hbm [shape: f32[2,32,96], index: 1, kind: input, shape index: {}]   ;;  %s5606_s2 = inlined_call_operand.hbm [shape: f32[2,1,96], index: 2, kind: input, shape index: {}]   ;;  %s5607_s3 = inlined_call_operand.hbm [shape: f32[2,32,32], index: 3, kind: input, shape index: {}]   ;;  %s5608_s4 = inlined_call_operand.hbm [shape: f32[2,1,32], index: 4, kind: input, shape index: {}]   ;;  %s5609_s5 = inlined_call_operand.hbm [shape: f32[2,1,32], index: 5, kind: input, shape index: {}]   ;;  %s5610_s6 = inlined_call_operand.hbm [shape: f32[2,1,32], index: 6, kind: input, shape index: {}]   ;;  %s5611_s7 = inlined_call_operand.hbm [shape: f32[2,32,64], index: 7, kind: input, shape index: {}]   ;;  %s5612_s8 = inlined_call_operand.hbm [shape: f32[2,1,64], index: 8, kind: input, shape index: {}]   ;;  %s5613_s9 = inlined_call_operand.hbm [shape: f32[2,64,32], index: 9, kind: input, shape index: {}]   ;;  %s5614_s10 = inlined_call_operand.hbm [shape: f32[2,1,32], index: 10, kind: input, shape index: {}]   ;;  %s5615_s11 = inlined_call_operand.hbm [shape: f32[1,32], index: 11, kind: input, shape index: {}]   ;;  %s5616_s12 = inlined_call_operand.hbm [shape: f32[1,32], index: 12, kind: input, shape index: {}]   ;;  %s5617_s13 = inlined_call_operand.hbm [shape: f32[16,32], index: 13, kind: output, shape index: {}]  }
   0x1   :  { %19 = vsyncpa [#allocation6], 0 }
   0x2   :  { %20 = vsyncpa [#allocation9], 0 }
   0x3   :  { %21 = vsyncpa [#allocation12], 0 }
   0x4   :  { %22 = vsyncpa [#allocation15], 0 }
   0x5   :  { %23 = vsyncpa [#allocation18], 0 }
   0x6   :  { %24 = vsyncpa [#allocation21], 0 }
   0x7   :  { %25 = vsyncpa [#allocation4], 0  ;;  %s4873_s25 = smov [#allocation5]   ;;  %s4874_s27 = smov [#allocation8]  }
   0x8   :  { %s43_s26 = sshll.u32 %s4873_s25, 4  ;;  %s67_s28 = sshll.u32 %s4874_s27, 4  ;;  %s44_s26 = int_to_ptr.vmem [resolvable:$true] %s43_s26  ;;  %s4975_s28 = int_to_ptr.vmem [resolvable:$true] %s67_s28 }
   0x9   :  { %s4549_s14 = scalar_lea.hbm %s5605_s1, 1024 }
   0xa   :  { %p4550_p0 = scmp.ne.s32.totalorder %s5605_s1, %s4549_s14  ;;  %p4553_p1 = scmp.lt.u32.totalorder %s4549_s14, %s5605_s1 }
   0xc   :  { %p4555_p2 = pnand %p4553_p1, %p4550_p0 }
   0xe   :  { %4558 = shalt.err (!%p4555_p2)
}
   0xf   :  { %s4559_s19 = scalar_lea.vmem %s44_s26, 1024  ;;  %p4564_p4 = scmp.lt.s32.totalorder %s44_s26, %s44_s26 }
  0x10   :  { %p4560_p3 = scmp.ne.s32.totalorder %s44_s26, %s4559_s19  ;;  %p4565_p5 = scmp.lt.s32.totalorder %s4559_s19, %s4559_s19 }
  0x12   :  { %p4566_p6 = por %p4565_p5, %p4564_p4 }
  0x14   :  { %p4567_p7 = pnand %p4566_p6, %p4560_p3 }
  0x16   :  { %4570 = shalt.err (!%p4567_p7)
}
  0x17   :  { %s4875_s20 = smov 128   ;;  %s4876_s21 = smov 8  }
  0x18   :  { %49 = dma.hbm_to_vmem [thread:$0]  %s5605_s1, 1024, %s44_s26, [#allocation6], %s4875_s20, %s4875_s20, %s4876_s21  }
  0x19   :  { %s4571_s27 = scalar_lea.hbm %s5607_s3, 1024 }
  0x1a   :  { %p4572_p8 = scmp.ne.s32.totalorder %s5607_s3, %s4571_s27  ;;  %p4575_p9 = scmp.lt.u32.totalorder %s4571_s27, %s5607_s3 }
  0x1c   :  { %p4577_p10 = pnand %p4575_p9, %p4572_p8 }
  0x1e   :  { %4580 = shalt.err (!%p4577_p10)
}
  0x1f   :  { %s4581_s16 = scalar_lea.vmem %s4975_s28, 1024  ;;  %p4586_p12 = scmp.lt.s32.totalorder %s4975_s28, %s4975_s28 }
  0x20   :  { %p4582_p11 = scmp.ne.s32.totalorder %s4975_s28, %s4581_s16  ;;  %p4587_p13 = scmp.lt.s32.totalorder %s4581_s16, %s4581_s16 }
  0x22   :  { %p4588_p0 = por %p4587_p13, %p4586_p12 }
  0x24   :  { %p4589_p1 = pnand %p4588_p0, %p4582_p11 }
  0x26   :  { %4592 = shalt.err (!%p4589_p1)
}
  0x27   :  { %73 = dma.hbm_to_vmem [thread:$0]  %s5607_s3, 1024, %s4975_s28, [#allocation9], %s4875_s20, %s4875_s20, %s4876_s21  }
  0x28   :  { %s4877_s17 = smov [#allocation11]   ;;  %s4878_s19 = smov [#allocation14]  }
  0x29   :  { %s91_s18 = sshll.u32 %s4877_s17, 4  ;;  %s115_s22 = sshll.u32 %s4878_s19, 4  ;;  %s92_s18 = int_to_ptr.vmem [resolvable:$true] %s91_s18  ;;  %s5012_s22 = int_to_ptr.vmem [resolvable:$true] %s115_s22 }
  0x2a   :  { %s4593_s25 = scalar_lea.hbm %s5609_s5, 32 }
  0x2b   :  { %p4594_p2 = scmp.ne.s32.totalorder %s5609_s5, %s4593_s25  ;;  %p4597_p3 = scmp.lt.u32.totalorder %s4593_s25, %s5609_s5 }
  0x2d   :  { %p4599_p4 = pnand %p4597_p3, %p4594_p2 }
  0x2f   :  { %4602 = shalt.err (!%p4599_p4)
}
  0x30   :  { %s4603_s3 = scalar_lea.vmem %s92_s18, 32  ;;  %p4608_p6 = scmp.lt.s32.totalorder %s92_s18, %s92_s18 }
  0x31   :  { %p4604_p5 = scmp.ne.s32.totalorder %s92_s18, %s4603_s3  ;;  %p4609_p7 = scmp.lt.s32.totalorder %s4603_s3, %s4603_s3 }
  0x33   :  { %p4610_p8 = por %p4609_p7, %p4608_p6 }
  0x35   :  { %p4611_p9 = pnand %p4610_p8, %p4604_p5 }
  0x37   :  { %4614 = shalt.err (!%p4611_p9)
}
  0x38   :  { %s4879_s28 = smov 16   ;;  %s4880_s15 = smov 1  }
  0x39   :  { %97 = dma.hbm_to_vmem [thread:$0]  %s5609_s5, 32, %s92_s18, [#allocation12], %s4879_s28, %s4879_s28, %s4880_s15  }
  0x3a   :  { %s4615_s19 = scalar_lea.hbm %s5611_s7, 1024 }
  0x3b   :  { %p4616_p10 = scmp.ne.s32.totalorder %s5611_s7, %s4615_s19  ;;  %p4619_p11 = scmp.lt.u32.totalorder %s4615_s19, %s5611_s7 }
  0x3d   :  { %p4621_p12 = pnand %p4619_p11, %p4616_p10 }
  0x3f   :  { %4624 = shalt.err (!%p4621_p12)
}
  0x40   :  { %s4625_s29 = scalar_lea.vmem %s5012_s22, 1024  ;;  %p4630_p0 = scmp.lt.s32.totalorder %s5012_s22, %s5012_s22 }
  0x41   :  { %p4626_p13 = scmp.ne.s32.totalorder %s5012_s22, %s4625_s29  ;;  %p4631_p1 = scmp.lt.s32.totalorder %s4625_s29, %s4625_s29 }
  0x43   :  { %p4632_p2 = por %p4631_p1, %p4630_p0 }
  0x45   :  { %p4633_p3 = pnand %p4632_p2, %p4626_p13 }
  0x47   :  { %4636 = shalt.err (!%p4633_p3)
}
  0x48   :  { %121 = dma.hbm_to_vmem [thread:$0]  %s5611_s7, 1024, %s5012_s22, [#allocation15], %s4875_s20, %s4875_s20, %s4876_s21  }
  0x49   :  { %s4881_s30 = smov [#allocation17]   ;;  %s4882_s3 = smov [#allocation20]  }
  0x4a   :  { %s139_s14 = sshll.u32 %s4881_s30, 4  ;;  %s164_s16 = sshll.u32 %s4882_s3, 4  ;;  %s140_s14 = int_to_ptr.vmem [resolvable:$true] %s139_s14  ;;  %s165_s16 = int_to_ptr.vmem [resolvable:$true] %s164_s16 }
  0x4b   :  { %s4637_s17 = scalar_lea.hbm %s5613_s9, 2048 }
  0x4c   :  { %p4638_p4 = scmp.ne.s32.totalorder %s5613_s9, %s4637_s17  ;;  %p4641_p5 = scmp.lt.u32.totalorder %s4637_s17, %s5613_s9 }
  0x4e   :  { %p4643_p6 = pnand %p4641_p5, %p4638_p4 }
  0x50   :  { %4646 = shalt.err (!%p4643_p6)
}
  0x51   :  { %s4647_s7 = scalar_lea.vmem %s140_s14, 2048  ;;  %p4652_p8 = scmp.lt.s32.totalorder %s140_s14, %s140_s14 }
  0x52   :  { %p4648_p7 = scmp.ne.s32.totalorder %s140_s14, %s4647_s7  ;;  %p4653_p9 = scmp.lt.s32.totalorder %s4647_s7, %s4647_s7 }
  0x54   :  { %p4654_p10 = por %p4653_p9, %p4652_p8 }
  0x56   :  { %p4655_p11 = pnand %p4654_p10, %p4648_p7 }
  0x58   :  { %4658 = shalt.err (!%p4655_p11)
}
  0x59   :  { %145 = dma.hbm_to_vmem [thread:$0]  %s5613_s9, 2048, %s140_s14, [#allocation18], %s4875_s20, %s4875_s20, %s4876_s21  }
  0x5a   :  { %s4659_s18 = scalar_lea.hbm %s5615_s11, 16 }
  0x5b   :  { %p4660_p12 = scmp.ne.s32.totalorder %s5615_s11, %s4659_s18  ;;  %p4663_p13 = scmp.lt.u32.totalorder %s4659_s18, %s5615_s11 }
  0x5d   :  { %p4665_p0 = pnand %p4663_p13, %p4660_p12 }
  0x5f   :  { %4668 = shalt.err (!%p4665_p0)
}
  0x60   :  { %s4669_s17 = scalar_lea.vmem %s165_s16, 16  ;;  %s4673_s19 = scalar_lea.vmem %s165_s16, 32 }
  0x61   :  { %p4670_p1 = scmp.ne.s32.totalorder %s165_s16, %s4669_s17  ;;  %p4674_p2 = scmp.lt.s32.totalorder %s165_s16, %s165_s16 }
  0x62   :  { %p4675_p3 = scmp.lt.s32.totalorder %s4673_s19, %s4669_s17 }
  0x64   :  { %p4676_p4 = por %p4675_p3, %p4674_p2 }
  0x66   :  { %p4677_p5 = pnand %p4676_p4, %p4670_p1 }
  0x68   :  { %4680 = shalt.err (!%p4677_p5)
}
  0x69   :  { %167 = dma.hbm_to_vmem [thread:$0]  %s5615_s11, 16, %s165_s16, [#allocation21]  }
  0x6a   :  { %s4883_s23 = smov [#allocation2]   ;;  %s4884_s25 = smov [#allocation7]  }
  0x6b   :  { %s31_s24 = sshll.u32 %s4883_s23, 4  ;;  %s55_s7 = sshll.u32 %s4884_s25, 4  ;;  %s32_s24 = int_to_ptr.vmem [resolvable:$true] %s31_s24  ;;  %s5076_s7 = int_to_ptr.vmem [resolvable:$true] %s55_s7 }
  0x6c   :  { %s4681_s29 = scalar_lea.hbm %s5604_s0, 256 }
  0x6d   :  { %p4682_p6 = scmp.ne.s32.totalorder %s5604_s0, %s4681_s29  ;;  %p4685_p7 = scmp.lt.u32.totalorder %s4681_s29, %s5604_s0 }
  0x6f   :  { %p4687_p8 = pnand %p4685_p7, %p4682_p6 }
  0x71   :  { %4690 = shalt.err (!%p4687_p8)
}
  0x72   :  { %s4691_s11 = scalar_lea.vmem %s32_s24, 256  ;;  %p4696_p10 = scmp.lt.s32.totalorder %s32_s24, %s32_s24 }
  0x73   :  { %p4692_p9 = scmp.ne.s32.totalorder %s32_s24, %s4691_s11  ;;  %p4697_p11 = scmp.lt.s32.totalorder %s4691_s11, %s4691_s11 }
  0x75   :  { %p4698_p12 = por %p4697_p11, %p4696_p10 }
  0x77   :  { %p4699_p13 = pnand %p4698_p12, %p4692_p9 }
  0x79   :  { %4702 = shalt.err (!%p4699_p13)
}
  0x7a   :  { %37 = dma.hbm_to_vmem [thread:$0]  %s5604_s0, 256, %s32_s24, [#allocation3], %s4875_s20, %s4875_s20, %s4876_s21  }
  0x7b   :  { %s4703_s19 = scalar_lea.hbm %s5606_s2, 32 }
  0x7c   :  { %p4704_p0 = scmp.ne.s32.totalorder %s5606_s2, %s4703_s19  ;;  %p4707_p1 = scmp.lt.u32.totalorder %s4703_s19, %s5606_s2 }
  0x7e   :  { %p4709_p2 = pnand %p4707_p1, %p4704_p0 }
  0x80   :  { %4712 = shalt.err (!%p4709_p2)
}
  0x81   :  { %s4713_s22 = scalar_lea.vmem %s5076_s7, 32  ;;  %p4718_p4 = scmp.lt.s32.totalorder %s5076_s7, %s5076_s7 }
  0x82   :  { %p4714_p3 = scmp.ne.s32.totalorder %s5076_s7, %s4713_s22  ;;  %p4719_p5 = scmp.lt.s32.totalorder %s4713_s22, %s4713_s22 }
  0x84   :  { %p4720_p6 = por %p4719_p5, %p4718_p4 }
  0x86   :  { %p4721_p7 = pnand %p4720_p6, %p4714_p3 }
  0x88   :  { %4724 = shalt.err (!%p4721_p7)
}
  0x89   :  { %61 = dma.hbm_to_vmem [thread:$0]  %s5606_s2, 32, %s5076_s7, [#allocation6], %s4879_s28, %s4879_s28, %s4880_s15  }
  0x8a   :  { %s4885_s27 = smov [#allocation10]   ;;  %s4886_s5 = smov [#allocation13]  }
  0x8b   :  { %s79_s29 = sshll.u32 %s4885_s27, 4  ;;  %s103_s18 = sshll.u32 %s4886_s5, 4  ;;  %s80_s29 = int_to_ptr.vmem [resolvable:$true] %s79_s29  ;;  %s5113_s18 = int_to_ptr.vmem [resolvable:$true] %s103_s18 }
  0x8c   :  { %s4725_s11 = scalar_lea.hbm %s5608_s4, 32 }
  0x8d   :  { %p4726_p8 = scmp.ne.s32.totalorder %s5608_s4, %s4725_s11  ;;  %p4729_p9 = scmp.lt.u32.totalorder %s4725_s11, %s5608_s4 }
  0x8f   :  { %p4731_p10 = pnand %p4729_p9, %p4726_p8 }
  0x91   :  { %4734 = shalt.err (!%p4731_p10)
}
  0x92   :  { %s4735_s2 = scalar_lea.vmem %s80_s29, 32  ;;  %p4740_p12 = scmp.lt.s32.totalorder %s80_s29, %s80_s29 }
  0x93   :  { %p4736_p11 = scmp.ne.s32.totalorder %s80_s29, %s4735_s2  ;;  %p4741_p13 = scmp.lt.s32.totalorder %s4735_s2, %s4735_s2 }
  0x95   :  { %p4742_p0 = por %p4741_p13, %p4740_p12 }
  0x97   :  { %p4743_p1 = pnand %p4742_p0, %p4736_p11 }
  0x99   :  { %4746 = shalt.err (!%p4743_p1)
}
  0x9a   :  { %85 = dma.hbm_to_vmem [thread:$0]  %s5608_s4, 32, %s80_s29, [#allocation9], %s4879_s28, %s4879_s28, %s4880_s15  }
  0x9b   :  { %s4747_s23 = scalar_lea.hbm %s5610_s6, 32 }
  0x9c   :  { %p4748_p2 = scmp.ne.s32.totalorder %s5610_s6, %s4747_s23  ;;  %p4751_p3 = scmp.lt.u32.totalorder %s4747_s23, %s5610_s6 }
  0x9e   :  { %p4753_p4 = pnand %p4751_p3, %p4748_p2 }
  0xa0   :  { %4756 = shalt.err (!%p4753_p4)
}
  0xa1   :  { %s4757_s27 = scalar_lea.vmem %s5113_s18, 32  ;;  %p4762_p6 = scmp.lt.s32.totalorder %s5113_s18, %s5113_s18 }
  0xa2   :  { %p4758_p5 = scmp.ne.s32.totalorder %s5113_s18, %s4757_s27  ;;  %p4763_p7 = scmp.lt.s32.totalorder %s4757_s27, %s4757_s27 }
  0xa4   :  { %p4764_p8 = por %p4763_p7, %p4762_p6 }
  0xa6   :  { %p4765_p9 = pnand %p4764_p8, %p4758_p5 }
  0xa8   :  { %4768 = shalt.err (!%p4765_p9)
}
  0xa9   :  { %109 = dma.hbm_to_vmem [thread:$0]  %s5610_s6, 32, %s5113_s18, [#allocation12], %s4879_s28, %s4879_s28, %s4880_s15  }
  0xaa   :  { %s4887_s5 = smov [#allocation16]   ;;  %s4888_s3 = smov [#allocation19]  }
  0xab   :  { %s127_s30 = sshll.u32 %s4887_s5, 4  ;;  %s151_s11 = sshll.u32 %s4888_s3, 4  ;;  %s128_s30 = int_to_ptr.vmem [resolvable:$true] %s127_s30  ;;  %s5150_s11 = int_to_ptr.vmem [resolvable:$true] %s151_s11 }
  0xac   :  { %s4769_s26 = scalar_lea.hbm %s5612_s8, 32 }
  0xad   :  { %p4770_p10 = scmp.ne.s32.totalorder %s5612_s8, %s4769_s26  ;;  %p4773_p11 = scmp.lt.u32.totalorder %s4769_s26, %s5612_s8 }
  0xaf   :  { %p4775_p12 = pnand %p4773_p11, %p4770_p10 }
  0xb1   :  { %4778 = shalt.err (!%p4775_p12)
}
  0xb2   :  { %s4779_s6 = scalar_lea.vmem %s128_s30, 32  ;;  %p4784_p0 = scmp.lt.s32.totalorder %s128_s30, %s128_s30 }
  0xb3   :  { %p4780_p13 = scmp.ne.s32.totalorder %s128_s30, %s4779_s6  ;;  %p4785_p1 = scmp.lt.s32.totalorder %s4779_s6, %s4779_s6 }
  0xb5   :  { %p4786_p2 = por %p4785_p1, %p4784_p0 }
  0xb7   :  { %p4787_p3 = pnand %p4786_p2, %p4780_p13 }
  0xb9   :  { %4790 = shalt.err (!%p4787_p3)
}
  0xba   :  { %133 = dma.hbm_to_vmem [thread:$0]  %s5612_s8, 32, %s128_s30, [#allocation15], %s4879_s28, %s4879_s28, %s4880_s15  }
  0xbb   :  { %s4791_s25 = scalar_lea.hbm %s5614_s10, 32 }
  0xbc   :  { %p4792_p4 = scmp.ne.s32.totalorder %s5614_s10, %s4791_s25  ;;  %p4795_p5 = scmp.lt.u32.totalorder %s4791_s25, %s5614_s10 }
  0xbe   :  { %p4797_p6 = pnand %p4795_p5, %p4792_p4 }
  0xc0   :  { %4800 = shalt.err (!%p4797_p6)
}
  0xc1   :  { %s4801_s4 = scalar_lea.vmem %s5150_s11, 32  ;;  %p4806_p8 = scmp.lt.s32.totalorder %s5150_s11, %s5150_s11 }
  0xc2   :  { %p4802_p7 = scmp.ne.s32.totalorder %s5150_s11, %s4801_s4  ;;  %p4807_p9 = scmp.lt.s32.totalorder %s4801_s4, %s4801_s4 }
  0xc4   :  { %p4808_p10 = por %p4807_p9, %p4806_p8 }
  0xc6   :  { %p4809_p11 = pnand %p4808_p10, %p4802_p7 }
  0xc8   :  { %4812 = shalt.err (!%p4809_p11)
}
  0xc9   :  { %157 = dma.hbm_to_vmem [thread:$0]  %s5614_s10, 32, %s5150_s11, [#allocation18], %s4879_s28, %s4879_s28, %s4880_s15  }
  0xca   :  { %s4889_s5 = smov [#allocation22]   ;;  %s4813_s1 = scalar_lea.hbm %s5616_s12, 16 }
  0xcb   :  { %s174_s30 = sshll.u32 %s4889_s5, 4  ;;  %p4814_p12 = scmp.ne.s32.totalorder %s5616_s12, %s4813_s1  ;;  %s175_s30 = int_to_ptr.vmem [resolvable:$true] %s174_s30 }
  0xcc   :  { %p4817_p13 = scmp.lt.u32.totalorder %s4813_s1, %s5616_s12 }
  0xce   :  { %p4819_p0 = pnand %p4817_p13, %p4814_p12 }
  0xd0   :  { %4822 = shalt.err (!%p4819_p0)
}
  0xd1   :  { %s4823_s19 = scalar_lea.vmem %s175_s30, 16  ;;  %s4827_s10 = scalar_lea.vmem %s175_s30, 32 }
  0xd2   :  { %p4824_p1 = scmp.ne.s32.totalorder %s175_s30, %s4823_s19  ;;  %p4828_p2 = scmp.lt.s32.totalorder %s175_s30, %s175_s30 }
  0xd3   :  { %p4829_p3 = scmp.lt.s32.totalorder %s4827_s10, %s4823_s19 }
  0xd5   :  { %p4830_p4 = por %p4829_p3, %p4828_p2 }
  0xd7   :  { %p4831_p5 = pnand %p4830_p4, %p4824_p1 }
  0xd9   :  { %4834 = shalt.err (!%p4831_p5)
}
  0xda   :  { %177 = dma.hbm_to_vmem [thread:$0]  %s5616_s12, 16, %s175_s30, [#allocation21]  }
  0xdb   :  { %4857 = dma.done.wait [#allocation3], 256  }
  0xdc   :  { %4858 = vsyncadd [#allocation3], 4294967040 }
  0xdd   :  { %4859 = dma.done.wait [#allocation6], 1056  }
  0xde   :  { %4860 = vsyncadd [#allocation6], 4294966240 }
  0xdf   :  { %4861 = dma.done.wait [#allocation9], 1056  }
  0xe0   :  { %4862 = vsyncadd [#allocation9], 4294966240 }
  0xe1   :  { %4863 = dma.done.wait [#allocation12], 64  }
  0xe2   :  { %4864 = vsyncadd [#allocation12], 4294967232 }
  0xe3   :  { %4865 = dma.done.wait [#allocation15], 1056  }
  0xe4   :  { %4866 = vsyncadd [#allocation15], 4294966240 }
  0xe5   :  { %4867 = dma.done.wait [#allocation18], 2080  }
  0xe6   :  { %4868 = vsyncadd [#allocation18], 4294965216 }
  0xe7   :  { %4869 = dma.done.wait [#allocation21], 32  }
  0xe8   :  { %4870 = vsyncadd [#allocation21], 4294967264  ;;  %vm230_vm0 = vcmask 261120   ;;  %v219_v0 = vld [vmem:[#allocation5] sm:$0xff]  ;;  %v220_v1 = vld [vmem:[#allocation5 + $0x8] sm:$0xff]  ;;  %v4890_v8 = vmov 0.0  }
  0xe9   :  { %v221_v2 = vld [vmem:[#allocation5 + $0x10] sm:$0xff]  ;;  %v4349_v3 = vpack.c.bf16 %v220_v1, %v219_v0  ;;  %v222_v4 = vld [vmem:[#allocation5 + $0x18] sm:$0xff]  ;;  %4106 = vmatprep.subr.mxu0 %v4890_v8  ;;  %vm4891_vm1 = vmmov 0   ;;  %v3887_v9 = vld [vmem:[#allocation7] ss:$0 sm:$0xff]  ;;  %s4892_s12 = smov 96  }
  0xea   :  { %v5199_v5 = vld [vmem:[#allocation2] sm:$0xff]  ;;  %v4353_v6 = vpack.c.bf16 %v222_v4, %v221_v2  ;;  %v5203_v7 = vld [vmem:[#allocation2 + $0x8] sm:$0xff]  ;;  %4108 = vmatprep.mubr.msk.f32.mxu0 %vm4891_vm1, %v4890_v8  ;;  %vm315_vm2 = vcmask 64512   ;;  %s4893_s6 = smov 64   ;;  %s4894_s18 = smov 88   ;;  %vm1660_vm3 = vcmask 195584  }
  0xeb   :  { %4093 = vmatprep.mubr.msk.f32.mxu1 %vm230_vm0, %v5199_v5  ;;  %4350 = vmatprep.subr.bf16.mxu1 %v4349_v3  ;;  %s4895_s9 = smov 120   ;;  %s4896_s14 = smov 56   ;;  %vm1657_vm4 = vcmask 130048   ;;  %vm1926_vm9 = vcmask 523264  }
  0xec   :  { %4352 = vmatpush3.bf16.msra.mxu1 %v4349_v3  ;;  %s4897_s23 = smov 80   ;;  %s4898_s25 = smov 112  }
  0xed   :  { %4354 = vmatprep.subr.bf16.mxu1 %v4353_v6  ;;  %s4899_s22 = smov 48   ;;  %s4900_s0 = smov 72  }
  0xee   :  { %s4901_s24 = smov 104   ;;  %s4902_s27 = smov 40  }
  0xef   :  { %s4903_s4 = smov 24  }
  0xf0   :  { %4356 = vmatpush3.bf16.msra.mxu1 %v4353_v6 }
  0xf1   :  { %4096 = vmatprep.subr.mxu1 %v4890_v8 }
  0xf3   :  { %4094 = vmatmul.mubr.msk.f32.vlgmr.msra.gmra.mrb[0].mxu1 %vm230_vm0, %v5203_v7 }
  0xf4   :  { %4098 = vmatprep.mubr.msk.f32.mxu1 %vm4891_vm1, %v4890_v8 }
 0x1c6   :  { %v4095_v10 = vpop.f32.mrb[0].mxu1 }
 0x1c7   :  { %v303_v11 = vpop.f32.mrb[1].mxu1  ;;  %v5217_v13 = vadd.f32 %v4095_v10, %v3887_v9 }
 0x1c8   :  { %v5213_v12 = vadd.f32 %v3887_v9, %v303_v11 }
 0x1ca   :  { %313 = vrot.lane.b32.xlu0 %v5213_v12, %s4892_s12 }
 0x1ce   :  { %391 = vrot.lane.b32.xlu0 %v5217_v13, %s4892_s12 }
 0x23c   :  { %v314_v14 = vpop.permute.xlu0 %313 }
 0x23d   :  { %4097 = vmatpush3.xpose.msk.msra.mxu1 %vm315_vm2, %v314_v14 }
 0x23e   :  { %4101 = vmatprep.subr.mxu1 %v4890_v8 }
 0x240   :  { %4099 = vmatmul.mubr.msk.f32.vlgmr.msra.gmra.mrb[2].mxu1 %vm315_vm2, %v5213_v12  ;;  %v392_v15 = vpop.permute.xlu0 %391 }
 0x241   :  { %4102 = vmatpush3.xpose.msk.msra.mxu1 %vm315_vm2, %v392_v15  ;;  %4103 = vmatprep.mubr.msk.f32.mxu1 %vm4891_vm1, %v4890_v8 }
 0x242   :  { %4111 = vmatprep.subr.mxu1 %v4890_v8 }
 0x244   :  { %4104 = vmatmul.mubr.msk.f32.vlgmr.msra.gmra.mrb[4].mxu1 %vm315_vm2, %v5217_v13 }
 0x245   :  { %4113 = vmatprep.mubr.msk.f32.mxu1 %vm4891_vm1, %v4890_v8 }
 0x313   :  { %v386_v16 = vpop.f32.mrb[2].mxu1 }
 0x314   :  { %v4100_v17 = vpop.f32.mrb[3].mxu1  ;;  %v467_v18 = vsel %vm315_vm2, %v386_v16, -inf }
 0x315   :  { %468 = vmax.xlane.f32.xlu1 %v467_v18 }
 0x317   :  { %v463_v19 = vpop.f32.mrb[4].mxu1 }
 0x318   :  { %v4105_v20 = vpop.f32.mrb[5].mxu1  ;;  %v470_v21 = vsel %vm315_vm2, %v463_v19, -inf }
 0x319   :  { %471 = vmax.xlane.f32.xlu1 %v470_v21 }
 0x32a   :  { %489 = vrot.lane.b32.xlu1 %v5213_v12, %s4893_s6 }
 0x32e   :  { %565 = vrot.lane.b32.xlu1 %v5217_v13, %s4893_s6 }
 0x332   :  { %643 = vrot.lane.b32.xlu1 %v5213_v12, %s4894_s18 }
 0x336   :  { %721 = vrot.lane.b32.xlu1 %v5217_v13, %s4894_s18 }
 0x3a2   :  { %v469_v22 = vpop.xlane.xlu1 %468 }
 0x3a3   :  { %v473_v23 = vsub.f32 %v386_v16, %v469_v22 }
 0x3a5   :  { %v475_v24 = vmul.f32 1.442695, %v473_v23 }
 0x3a6   :  { %v472_v25 = vpop.xlane.xlu1 %471 }
 0x3a7   :  { %4461 = vpow2.f32 %v475_v24  ;;  %v474_v26 = vsub.f32 %v463_v19, %v472_v25 }
 0x3a9   :  { %v477_v27 = vmul.f32 1.442695, %v474_v26 }
 0x3aa   :  { %v490_v28 = vpop.permute.xlu1 %489 }
 0x3ab   :  { %4463 = vpow2.f32 %v477_v27  ;;  %4107 = vmatpush3.msra.mxu0 %v490_v28 }
 0x3ac   :  { %4116 = vmatprep.subr.mxu0 %v4890_v8 }
 0x3ae   :  { %v566_v29 = vpop.permute.xlu1 %565 }
 0x3af   :  { %4112 = vmatpush3.msra.mxu1 %v566_v29 }
 0x3b0   :  { %4121 = vmatprep.subr.mxu1 %v4890_v8 }
 0x3b1   :  { %v4462_v30 = vpop.eup %4461 }
 0x3b2   :  { %v479_v31 = vsel %vm315_vm2, %v4462_v30, 0.0  ;;  %v644_v34 = vpop.permute.xlu1 %643 }
 0x3b3   :  { %480 = vadd.xlane.f32.xlu0 %v479_v31 }
 0x3b5   :  { %v4464_v32 = vpop.eup %4463 }
 0x3b6   :  { %v482_v33 = vsel %vm315_vm2, %v4464_v32, 0.0  ;;  %v722_v35 = vpop.permute.xlu1 %721 }
 0x3b7   :  { %483 = vadd.xlane.f32.xlu1 %v482_v33 }
 0x3c8   :  { %719 = vrot.lane.b32.xlu1 %v5217_v13, %s4895_s9 }
 0x3c9   :  { %641 = vrot.lane.b32.xlu0 %v5213_v12, %s4895_s9 }
 0x440   :  { %v481_v36 = vpop.xlane.xlu0 %480 }
 0x441   :  { %4465 = vrcp.f32 %v481_v36 }
 0x444   :  { %v484_v37 = vpop.xlane.xlu1 %483  ;;  %v642_v42 = vpop.permute.xlu0 %641 }
 0x445   :  { %4467 = vrcp.f32 %v484_v37 }
 0x448   :  { %v720_v43 = vpop.permute.xlu1 %719 }
 0x44b   :  { %v4466_v38 = vpop.eup %4465 }
 0x44c   :  { %v486_v39 = vmul.f32 %v4466_v38, %v4462_v30 }
 0x44e   :  { %4109 = vmatmul.mubr.msk.f32.vlgmr.msra.gmra.mrb[0].mxu0 %vm315_vm2, %v486_v39 }
 0x44f   :  { %v4468_v40 = vpop.eup %4467  ;;  %4117 = vmatpush3.xpose.msk.msra.mxu0 %vm315_vm2, %v644_v34  ;;  %4118 = vmatprep.mubr.msk.f32.mxu0 %vm4891_vm1, %v4890_v8 }
 0x450   :  { %v488_v41 = vmul.f32 %v4468_v40, %v4464_v32  ;;  %4126 = vmatprep.subr.mxu0 %v4890_v8 }
 0x452   :  { %4114 = vmatmul.mubr.msk.f32.vlgmr.msra.gmra.mrb[6].mxu1 %vm315_vm2, %v488_v41  ;;  %4119 = vmatmul.mubr.msk.f32.vlgmr.msra.gmra.mrb[2].mxu0 %vm315_vm2, %v642_v42 }
 0x453   :  { %4122 = vmatpush3.xpose.msk.msra.mxu1 %vm315_vm2, %v722_v35  ;;  %4123 = vmatprep.mubr.msk.f32.mxu1 %vm4891_vm1, %v4890_v8 }
 0x454   :  { %4131 = vmatprep.subr.mxu1 %v4890_v8  ;;  %4128 = vmatprep.mubr.msk.f32.mxu0 %vm4891_vm1, %v4890_v8 }
 0x456   :  { %4124 = vmatmul.mubr.msk.f32.vlgmr.msra.gmra.mrb[8].mxu1 %vm315_vm2, %v720_v43 }
 0x457   :  { %4133 = vmatprep.mubr.msk.f32.mxu1 %vm4891_vm1, %v4890_v8 }
 0x521   :  { %v5267_v44 = vpop.f32.mrb[0].mxu0 }
 0x522   :  { %v4110_v45 = vpop.f32.mrb[1].mxu0 }
 0x525   :  { %v5269_v46 = vpop.f32.mrb[6].mxu1  ;;  %v715_v47 = vpop.f32.mrb[2].mxu0 }
 0x526   :  { %v4115_v48 = vpop.f32.mrb[7].mxu1  ;;  %v4120_v49 = vpop.f32.mrb[3].mxu0  ;;  %v797_v50 = vsel %vm315_vm2, %v715_v47, -inf }
 0x527   :  { %798 = vmax.xlane.f32.xlu1 %v797_v50 }
 0x529   :  { %v793_v51 = vpop.f32.mrb[8].mxu1 }
 0x52a   :  { %v4125_v52 = vpop.f32.mrb[9].mxu1  ;;  %v800_v53 = vsel %vm315_vm2, %v793_v51, -inf }
 0x52b   :  { %801 = vmax.xlane.f32.xlu0 %v800_v53 }
 0x538   :  { %819 = vrot.lane.b32.xlu1 %v5213_v12, %s4896_s14 }
 0x53c   :  { %973 = vrot.lane.b32.xlu1 %v5213_v12, %s4897_s23 }
 0x540   :  { %1051 = vrot.lane.b32.xlu1 %v5217_v13, %s4897_s23 }
 0x541   :  { %895 = vrot.lane.b32.xlu0 %v5217_v13, %s4896_s14 }
 0x545   :  { %971 = vrot.lane.b32.xlu0 %v5213_v12, %s4898_s25 }
 0x5b4   :  { %v799_v54 = vpop.xlane.xlu1 %798 }
 0x5b5   :  { %v803_v55 = vsub.f32 %v715_v47, %v799_v54 }
 0x5b7   :  { %v805_v56 = vmul.f32 1.442695, %v803_v55 }
 0x5b8   :  { %v820_v57 = vpop.permute.xlu1 %819  ;;  %v802_v58 = vpop.xlane.xlu0 %801 }
 0x5b9   :  { %4469 = vpow2.f32 %v805_v56  ;;  %v804_v59 = vsub.f32 %v793_v51, %v802_v58  ;;  %4127 = vmatpush3.msra.mxu0 %v820_v57 }
 0x5ba   :  { %4136 = vmatprep.subr.mxu0 %v4890_v8 }
 0x5bb   :  { %v807_v60 = vmul.f32 1.442695, %v804_v59 }
 0x5bc   :  { %v896_v61 = vpop.permute.xlu0 %895  ;;  %v974_v2 = vpop.permute.xlu1 %973 }
 0x5bd   :  { %4471 = vpow2.f32 %v807_v60  ;;  %4132 = vmatpush3.msra.mxu1 %v896_v61 }
 0x5be   :  { %4141 = vmatprep.subr.mxu1 %v4890_v8 }
 0x5c0   :  { %v1052_v3 = vpop.permute.xlu1 %1051  ;;  %v972_v15 = vpop.permute.xlu0 %971 }
 0x5c3   :  { %v4470_v62 = vpop.eup %4469 }
 0x5c4   :  { %v809_v63 = vsel %vm315_vm2, %v4470_v62, 0.0 }
 0x5c5   :  { %810 = vadd.xlane.f32.xlu1 %v809_v63 }
 0x5c7   :  { %v4472_v0 = vpop.eup %4471 }
 0x5c8   :  { %v812_v1 = vsel %vm315_vm2, %v4472_v0, 0.0 }
 0x5c9   :  { %813 = vadd.xlane.f32.xlu1 %v812_v1 }
 0x5da   :  { %1049 = vrot.lane.b32.xlu1 %v5217_v13, %s4898_s25 }
 0x652   :  { %v811_v4 = vpop.xlane.xlu1 %810 }
 0x653   :  { %4473 = vrcp.f32 %v811_v4 }
 0x656   :  { %v814_v6 = vpop.xlane.xlu1 %813 }
 0x657   :  { %4475 = vrcp.f32 %v814_v6 }
 0x65a   :  { %v1050_v16 = vpop.permute.xlu1 %1049 }
 0x65d   :  { %v4474_v9 = vpop.eup %4473 }
 0x65e   :  { %v816_v10 = vmul.f32 %v4474_v9, %v4470_v62 }
 0x660   :  { %4129 = vmatmul.mubr.msk.f32.vlgmr.msra.gmra.mrb[4].mxu0 %vm315_vm2, %v816_v10 }
 0x661   :  { %v4476_v11 = vpop.eup %4475  ;;  %4137 = vmatpush3.xpose.msk.msra.mxu0 %vm315_vm2, %v974_v2  ;;  %4138 = vmatprep.mubr.msk.f32.mxu0 %vm4891_vm1, %v4890_v8 }
 0x662   :  { %v818_v14 = vmul.f32 %v4476_v11, %v4472_v0  ;;  %4146 = vmatprep.subr.mxu0 %v4890_v8 }
 0x664   :  { %4134 = vmatmul.mubr.msk.f32.vlgmr.msra.gmra.mrb[10].mxu1 %vm315_vm2, %v818_v14  ;;  %4139 = vmatmul.mubr.msk.f32.vlgmr.msra.gmra.mrb[6].mxu0 %vm315_vm2, %v972_v15 }
 0x665   :  { %4142 = vmatpush3.xpose.msk.msra.mxu1 %vm315_vm2, %v1052_v3  ;;  %4143 = vmatprep.mubr.msk.f32.mxu1 %vm4891_vm1, %v4890_v8 }
 0x666   :  { %4151 = vmatprep.subr.mxu1 %v4890_v8  ;;  %4148 = vmatprep.mubr.msk.f32.mxu0 %vm4891_vm1, %v4890_v8 }
 0x668   :  { %4144 = vmatmul.mubr.msk.f32.vlgmr.msra.gmra.mrb[12].mxu1 %vm315_vm2, %v1050_v16 }
 0x669   :  { %4153 = vmatprep.mubr.msk.f32.mxu1 %vm4891_vm1, %v4890_v8 }
 0x733   :  { %v5305_v17 = vpop.f32.mrb[4].mxu0 }
 0x734   :  { %v4130_v18 = vpop.f32.mrb[5].mxu0 }
 0x737   :  { %v5307_v19 = vpop.f32.mrb[10].mxu1  ;;  %v1045_v20 = vpop.f32.mrb[6].mxu0 }
 0x738   :  { %v4135_v21 = vpop.f32.mrb[11].mxu1  ;;  %v4140_v22 = vpop.f32.mrb[7].mxu0  ;;  %v1127_v23 = vsel %vm315_vm2, %v1045_v20, -inf }
 0x739   :  { %1128 = vmax.xlane.f32.xlu0 %v1127_v23  ;;  %v1666_v22 = vld [vmem:[#allocation8 + $0x18] sm:$0xff] }
 0x73b   :  { %v1123_v24 = vpop.f32.mrb[12].mxu1 }
 0x73c   :  { %v4145_v25 = vpop.f32.mrb[13].mxu1  ;;  %v1130_v26 = vsel %vm315_vm2, %v1123_v24, -inf }
 0x73d   :  { %1131 = vmax.xlane.f32.xlu1 %v1130_v26 }
 0x74e   :  { %1149 = vrot.lane.b32.xlu1 %v5213_v12, %s4899_s22 }
 0x74f   :  { %1225 = vrot.lane.b32.xlu0 %v5217_v13, %s4899_s22 }
 0x752   :  { %1303 = vrot.lane.b32.xlu1 %v5213_v12, %s4900_s0 }
 0x756   :  { %1381 = vrot.lane.b32.xlu1 %v5217_v13, %s4900_s0 }
 0x75a   :  { %1379 = vrot.lane.b32.xlu1 %v5217_v13, %s4901_s24 }
 0x7c6   :  { %v1129_v27 = vpop.xlane.xlu0 %1128 }
 0x7c7   :  { %v1133_v28 = vsub.f32 %v1045_v20, %v1129_v27  ;;  %v1664_v20 = vld [vmem:[#allocation8 + $0x8] sm:$0xff] }
 0x7c9   :  { %v1135_v29 = vmul.f32 1.442695, %v1133_v28 }
 0x7ca   :  { %v1132_v30 = vpop.xlane.xlu1 %1131  ;;  %v1226_v31 = vpop.permute.xlu0 %1225 }
 0x7cb   :  { %4477 = vpow2.f32 %v1135_v29  ;;  %v1134_v32 = vsub.f32 %v1123_v24, %v1132_v30  ;;  %4152 = vmatpush3.msra.mxu1 %v1226_v31 }
 0x7cc   :  { %4161 = vmatprep.subr.mxu1 %v4890_v8 }
 0x7cd   :  { %v1137_v33 = vmul.f32 1.442695, %v1134_v32 }
 0x7ce   :  { %v1150_v34 = vpop.permute.xlu1 %1149 }
 0x7cf   :  { %4479 = vpow2.f32 %v1137_v33  ;;  %4147 = vmatpush3.msra.mxu0 %v1150_v34 }
 0x7d0   :  { %4156 = vmatprep.subr.mxu0 %v4890_v8 }
 0x7d2   :  { %v1304_v41 = vpop.permute.xlu1 %1303 }
 0x7d5   :  { %v4478_v35 = vpop.eup %4477 }
 0x7d6   :  { %v1139_v36 = vsel %vm315_vm2, %v4478_v35, 0.0  ;;  %v1382_v47 = vpop.permute.xlu1 %1381 }
 0x7d7   :  { %1140 = vadd.xlane.f32.xlu0 %v1139_v36 }
 0x7d9   :  { %v4480_v37 = vpop.eup %4479 }
 0x7da   :  { %v1142_v38 = vsel %vm315_vm2, %v4480_v37, 0.0  ;;  %v1380_v50 = vpop.permute.xlu1 %1379 }
 0x7db   :  { %1143 = vadd.xlane.f32.xlu0 %v1142_v38 }
 0x7f1   :  { %1301 = vrot.lane.b32.xlu0 %v5213_v12, %s4901_s24 }
 0x864   :  { %v1141_v39 = vpop.xlane.xlu0 %1140 }
 0x865   :  { %4481 = vrcp.f32 %v1141_v39 }
 0x868   :  { %v1144_v40 = vpop.xlane.xlu0 %1143 }
 0x869   :  { %4483 = vrcp.f32 %v1144_v40 }
 0x86c   :  { %v1302_v49 = vpop.permute.xlu0 %1301 }
 0x86f   :  { %v4482_v42 = vpop.eup %4481 }
 0x870   :  { %v1146_v43 = vmul.f32 %v4482_v42, %v4478_v35 }
 0x872   :  { %4149 = vmatmul.mubr.msk.f32.vlgmr.msra.gmra.mrb[8].mxu0 %vm315_vm2, %v1146_v43 }
 0x873   :  { %v4484_v45 = vpop.eup %4483  ;;  %4157 = vmatpush3.xpose.msk.msra.mxu0 %vm315_vm2, %v1304_v41  ;;  %4158 = vmatprep.mubr.msk.f32.mxu0 %vm4891_vm1, %v4890_v8 }
 0x874   :  { %v1148_v48 = vmul.f32 %v4484_v45, %v4480_v37  ;;  %4166 = vmatprep.subr.mxu0 %v4890_v8 }
 0x876   :  { %4154 = vmatmul.mubr.msk.f32.vlgmr.msra.gmra.mrb[14].mxu1 %vm315_vm2, %v1148_v48  ;;  %4159 = vmatmul.mubr.msk.f32.vlgmr.msra.gmra.mrb[10].mxu0 %vm315_vm2, %v1302_v49 }
 0x877   :  { %4162 = vmatpush3.xpose.msk.msra.mxu1 %vm315_vm2, %v1382_v47  ;;  %4163 = vmatprep.mubr.msk.f32.mxu1 %vm4891_vm1, %v4890_v8 }
 0x878   :  { %4171 = vmatprep.subr.mxu1 %v4890_v8  ;;  %4168 = vmatprep.mubr.msk.f32.mxu0 %vm4891_vm1, %v4890_v8 }
 0x87a   :  { %4164 = vmatmul.mubr.msk.f32.vlgmr.msra.gmra.mrb[16].mxu1 %vm315_vm2, %v1380_v50 }
 0x87b   :  { %4173 = vmatprep.mubr.msk.f32.mxu1 %vm4891_vm1, %v4890_v8 }
 0x945   :  { %v1221_v51 = vpop.f32.mrb[8].mxu0 }
 0x946   :  { %v4150_v52 = vpop.f32.mrb[9].mxu0 }
 0x949   :  { %v1297_v53 = vpop.f32.mrb[14].mxu1  ;;  %v1375_v54 = vpop.f32.mrb[10].mxu0 }
 0x94a   :  { %v4155_v55 = vpop.f32.mrb[15].mxu1  ;;  %v4160_v56 = vpop.f32.mrb[11].mxu0  ;;  %v1457_v57 = vsel %vm315_vm2, %v1375_v54, -inf }
 0x94b   :  { %1458 = vmax.xlane.f32.xlu0 %v1457_v57  ;;  %v1817_v57 = vld [vmem:[#allocation14] sm:$0xff] }
 0x94d   :  { %v1453_v58 = vpop.f32.mrb[16].mxu1 }
 0x94e   :  { %v4165_v59 = vpop.f32.mrb[17].mxu1  ;;  %v1460_v60 = vsel %vm315_vm2, %v1453_v58, -inf }
 0x94f   :  { %1461 = vmax.xlane.f32.xlu1 %v1460_v60  ;;  %v1819_v59 = vld [vmem:[#allocation14 + $0x10] sm:$0xff] }
 0x960   :  { %1479 = vrot.lane.b32.xlu1 %v5213_v12, %s4902_s27 }
 0x964   :  { %1633 = vrot.lane.b32.xlu1 %v5305_v17, %s4876_s21 }
 0x968   :  { %1635 = vrot.lane.b32.xlu1 %v5307_v19, %s4876_s21  ;;  %v1663_v19 = vld [vmem:[#allocation8] sm:$0xff] }
 0x969   :  { %v4357_v21 = vpack.c.bf16 %v1664_v20, %v1663_v19 }
 0x96c   :  { %1643 = vrot.lane.b32.xlu1 %v1297_v53, %s4879_s28 }
 0x9d8   :  { %v1459_v61 = vpop.xlane.xlu0 %1458 }
 0x9d9   :  { %v1463_v62 = vsub.f32 %v1375_v54, %v1459_v61  ;;  %v1820_v61 = vld [vmem:[#allocation14 + $0x18] sm:$0xff] }
 0x9db   :  { %v1465_v63 = vmul.f32 1.442695, %v1463_v62  ;;  %v4369_v62 = vpack.c.bf16 %v1820_v61, %v1819_v59 }
 0x9dc   :  { %v1462_v0 = vpop.xlane.xlu1 %1461 }
 0x9dd   :  { %4485 = vpow2.f32 %v1465_v63  ;;  %v1464_v1 = vsub.f32 %v1453_v58, %v1462_v0  ;;  %v1818_v58 = vld [vmem:[#allocation14 + $0x8] sm:$0xff] }
 0x9de   :  { %v4365_v60 = vpack.c.bf16 %v1818_v58, %v1817_v57  ;;  %v1911_v63 = vld [vmem:[#allocation17] sm:$0xff]  ;;  %v1912_v0 = vld [vmem:[#allocation17 + $0x8] sm:$0xff] }
 0x9df   :  { %v1467_v2 = vmul.f32 1.442695, %v1464_v1  ;;  %v1913_v1 = vld [vmem:[#allocation17 + $0x10] sm:$0xff] }
 0x9e0   :  { %v1480_v3 = vpop.permute.xlu1 %1479 }
 0x9e1   :  { %4487 = vpow2.f32 %v1467_v2  ;;  %4167 = vmatpush3.msra.mxu0 %v1480_v3  ;;  %v4373_v2 = vpack.c.bf16 %v1912_v0, %v1911_v63  ;;  %v1914_v3 = vld [vmem:[#allocation17 + $0x18] sm:$0xff] }
 0x9e2   :  { %4358 = vmatprep.subr.bf16.mxu0 %v4357_v21 }
 0x9e4   :  { %v1634_v28 = vpop.permute.xlu1 %1633 }
 0x9e5   :  { %v1655_v31 = vsel %vm315_vm2, %v5267_v44, %v1634_v28  ;;  %v3914_v44 = vld [vmem:[#allocation10] ss:$0 sm:$0xff] }
 0x9e7   :  { %v4486_v4 = vpop.eup %4485 }
 0x9e8   :  { %v1469_v12 = vsel %vm315_vm2, %v4486_v4, 0.0  ;;  %v1636_v29 = vpop.permute.xlu1 %1635 }
 0x9e9   :  { %1470 = vadd.xlane.f32.xlu0 %v1469_v12  ;;  %v1656_v36 = vsel %vm315_vm2, %v5269_v46, %v1636_v29  ;;  %v1915_v12 = vld [vmem:[#allocation17 + $0x20] sm:$0xff] }
 0x9eb   :  { %v4488_v6 = vpop.eup %4487 }
 0x9ec   :  { %v1472_v9 = vsel %vm315_vm2, %v4488_v6, 0.0  ;;  %v1644_v32 = vpop.permute.xlu1 %1643 }
 0x9ed   :  { %1473 = vadd.xlane.f32.xlu0 %v1472_v9  ;;  %v1659_v37 = vsel %vm1657_vm4, %v1656_v36, %v1644_v32 }
 0xa03   :  { %1555 = vrot.lane.b32.xlu0 %v5217_v13, %s4902_s27  ;;  %v1665_v13 = vld [vmem:[#allocation8 + $0x10] sm:$0xff] }
 0xa04   :  { %v4361_v23 = vpack.c.bf16 %v1666_v22, %v1665_v13 }
 0xa07   :  { %1641 = vrot.lane.b32.xlu0 %v1221_v51, %s4879_s28 }
 0xa76   :  { %v1471_v10 = vpop.xlane.xlu0 %1470 }
 0xa77   :  { %4489 = vrcp.f32 %v1471_v10 }
 0xa7a   :  { %v1474_v11 = vpop.xlane.xlu0 %1473 }
 0xa7b   :  { %4491 = vrcp.f32 %v1474_v11 }
 0xa7e   :  { %v1556_v14 = vpop.permute.xlu0 %1555 }
 0xa7f   :  { %4172 = vmatpush3.msra.mxu1 %v1556_v14 }
 0xa80   :  { %4366 = vmatprep.subr.bf16.mxu1 %v4365_v60 }
 0xa81   :  { %v4490_v15 = vpop.eup %4489 }
 0xa82   :  { %v1476_v16 = vmul.f32 %v4490_v15, %v4486_v4  ;;  %v1642_v30 = vpop.permute.xlu0 %1641  ;;  %v4377_v4 = vpack.c.bf16 %v1914_v3, %v1913_v1 }
 0xa83   :  { %v1658_v33 = vsel %vm1657_vm4, %v1655_v31, %v1642_v30  ;;  %v3918_v30 = vld [vmem:[#allocation13] ss:$0 sm:$0xff] }
 0xa84   :  { %4169 = vmatmul.mubr.msk.f32.vlgmr.msra.gmra.mrb[12].mxu0 %vm315_vm2, %v1476_v16 }
 0xa85   :  { %v4492_v17 = vpop.eup %4491  ;;  %4360 = vmatpush3.bf16.msra.mxu0 %v4357_v21 }
 0xa86   :  { %v1478_v18 = vmul.f32 %v4492_v17, %v4488_v6  ;;  %4362 = vmatprep.subr.bf16.mxu0 %v4361_v23  ;;  %v1916_v6 = vld [vmem:[#allocation17 + $0x28] sm:$0xff] }
 0xa87   :  { %v4381_v9 = vpack.c.bf16 %v1916_v6, %v1915_v12 }
 0xa88   :  { %4174 = vmatmul.mubr.msk.f32.vlgmr.msra.gmra.mrb[18].mxu1 %vm315_vm2, %v1478_v18 }
 0xa89   :  { %4364 = vmatpush3.bf16.msra.mxu0 %v4361_v23  ;;  %4368 = vmatpush3.bf16.msra.mxu1 %v4365_v60  ;;  %v3925_v60 = vld [vmem:[#allocation7 + $0x1] ss:$0 sm:$0xff] }
 0xa8a   :  { %4370 = vmatprep.subr.bf16.mxu1 %v4369_v62  ;;  %4374 = vmatprep.subr.bf16.mxu0 %v4373_v2 }
 0xa8d   :  { %4372 = vmatpush3.bf16.msra.mxu1 %v4369_v62 }
 0xb57   :  { %v1551_v24 = vpop.f32.mrb[12].mxu0 }
 0xb58   :  { %1649 = vrot.lane.b32.xlu0 %v1551_v24, %s4903_s4  ;;  %v4170_v25 = vpop.f32.mrb[13].mxu0 }
 0xb5b   :  { %v1627_v26 = vpop.f32.mrb[18].mxu1 }
 0xb5c   :  { %1651 = vrot.lane.b32.xlu1 %v1627_v26, %s4903_s4  ;;  %v4175_v27 = vpop.f32.mrb[19].mxu1 }
 0xb5d   :  { %v3917_v27 = vld [vmem:[#allocation11] ss:$0 sm:$0xff] }
 0xbca   :  { %v1650_v34 = vpop.permute.xlu0 %1649 }
 0xbcb   :  { %v1661_v35 = vsel %vm1660_vm3, %v1658_v33, %v1650_v34 }
 0xbcc   :  { %4184 = vmatprep.mubr.msk.f32.mxu0 %vm230_vm0, %v1661_v35 }
 0xbce   :  { %v1652_v38 = vpop.permute.xlu1 %1651 }
 0xbcf   :  { %v1662_v39 = vsel %vm1660_vm3, %v1659_v37, %v1652_v38  ;;  %v1917_v37 = vld [vmem:[#allocation17 + $0x30] sm:$0xff]  ;;  %v1918_v38 = vld [vmem:[#allocation17 + $0x38] sm:$0xff] }
 0xbd0   :  { %4185 = vmatmul.mubr.msk.f32.vlgmr.msra.gmra.mrb[14].mxu0 %vm230_vm0, %v1662_v39  ;;  %v4385_v39 = vpack.c.bf16 %v1918_v38, %v1917_v37 }
 0xbd1   :  { %4376 = vmatpush3.bf16.msra.mxu0 %v4373_v2 }
 0xbd2   :  { %4378 = vmatprep.subr.bf16.mxu0 %v4377_v4 }
 0xbd5   :  { %4380 = vmatpush3.bf16.msra.mxu0 %v4377_v4 }
 0xbd6   :  { %4382 = vmatprep.subr.bf16.mxu0 %v4381_v9 }
 0xbd9   :  { %4384 = vmatpush3.bf16.msra.mxu0 %v4381_v9 }
 0xbda   :  { %4386 = vmatprep.subr.bf16.mxu0 %v4385_v39 }
 0xbdd   :  { %4388 = vmatpush3.bf16.msra.mxu0 %v4385_v39 }
 0xbde   :  { %4238 = vmatprep.subr.mxu0 %v4890_v8 }
 0xca3   :  { %v4186_v40 = vpop.f32.mrb[14].mxu0 }
 0xca4   :  { %v1752_v41 = vadd.f32 %v4186_v40, %v3914_v44  ;;  %v1746_v42 = vpop.f32.mrb[15].mxu0  ;;  %v2012_v40 = vld [vmem:[#allocation5 + $0x28] sm:$0xff] }
 0xca5   :  { %v1747_v43 = vadd.f32 %v3914_v44, %v1746_v42  ;;  %v2011_v44 = vld [vmem:[#allocation5 + $0x20] sm:$0xff]  ;;  %v3919_v42 = vld [vmem:[#allocation16] ss:$0 sm:$0xff] }
 0xca6   :  { %v5372_v45 = vadd.f32 %v1752_v41, %v5203_v7  ;;  %v4389_v41 = vpack.c.bf16 %v2012_v40, %v2011_v44 }
 0xca7   :  { %v5375_v47 = vadd.f32 %v1747_v43, %v5199_v5 }
 0xca8   :  { %v1762_v46 = vsel %vm230_vm0, %v5372_v45, 0.0  ;;  %4390 = vmatprep.subr.bf16.mxu1 %v4389_v41 }
 0xca9   :  { %1763 = vadd.xlane.f32.xlu1 %v1762_v46  ;;  %v1759_v48 = vsel %vm230_vm0, %v5375_v47, 0.0 }
 0xcaa   :  { %1760 = vadd.xlane.f32.xlu0 %v1759_v48 }
 0xd36   :  { %v1764_v49 = vpop.xlane.xlu1 %1763 }
 0xd37   :  { %v1767_v50 = vmul.f32 0.03125, %v1764_v49  ;;  %v1761_v51 = vpop.xlane.xlu0 %1760 }
 0xd38   :  { %v1766_v52 = vmul.f32 0.03125, %v1761_v51 }
 0xd39   :  { %v1769_v53 = vsub.f32 %v5372_v45, %v1767_v50 }
 0xd3a   :  { %v1768_v7 = vsub.f32 %v5375_v47, %v1766_v52  ;;  %v2013_v52 = vld [vmem:[#allocation5 + $0x30] sm:$0xff] }
 0xd3b   :  { %v1771_v55 = vmul.f32 %v1769_v53, %v1769_v53  ;;  %v1802_v32 = vmul.f32 %v3917_v27, %v1769_v53  ;;  %v2014_v53 = vld [vmem:[#allocation5 + $0x38] sm:$0xff] }
 0xd3c   :  { %v1770_v54 = vmul.f32 %v1768_v7, %v1768_v7  ;;  %v1801_v28 = vmul.f32 %v3917_v27, %v1768_v7  ;;  %v4393_v7 = vpack.c.bf16 %v2014_v53, %v2013_v52 }
 0xd3d   :  { %v1775_v56 = vsel %vm230_vm0, %v1771_v55, 0.0 }
 0xd3e   :  { %v1772_v5 = vsel %vm230_vm0, %v1770_v54, 0.0  ;;  %v3922_v54 = vld [vmem:[#allocation19] ss:$0 sm:$0xff] }
 0xd3f   :  { %1773 = vadd.xlane.f32.xlu0 %v1772_v5 }
 0xd43   :  { %1776 = vadd.xlane.f32.xlu0 %v1775_v56 }
 0xdcc   :  { %v1774_v10 = vpop.xlane.xlu0 %1773 }
 0xdcd   :  { %v1779_v11 = vmul.f32 0.032258064, %v1774_v10 }
 0xdcf   :  { %4493 = vrsqrt.f32 %v1779_v11  ;;  %vm1783_vm5 = vcmp.eq.f32.partialorder %v1779_v11, inf  ;;  %v1786_v18 = vand.u32 2147483648, %v1779_v11  ;;  %vm1785_vm6 = vcmp.eq.f32.partialorder %v1779_v11, 0.0 }
 0xdd0   :  { %v1777_v14 = vpop.xlane.xlu0 %1776 }
 0xdd1   :  { %v1780_v15 = vmul.f32 0.032258064, %v1777_v14 }
 0xdd3   :  { %4495 = vrsqrt.f32 %v1780_v15  ;;  %vm1790_vm7 = vcmp.eq.f32.partialorder %v1780_v15, inf  ;;  %v1793_v23 = vand.u32 2147483648, %v1780_v15  ;;  %vm1792_vm8 = vcmp.eq.f32.partialorder %v1780_v15, 0.0 }
 0xdd9   :  { %v4494_v16 = vpop.eup %4493 }
 0xdda   :  { %v1782_v17 = vmul.f32 %v4494_v16, %v1779_v11 }
 0xddc   :  { %v1784_v19 = vsel %vm1783_vm5, %v1779_v11, %v1782_v17 }
 0xddd   :  { %v4496_v20 = vpop.eup %4495  ;;  %v1787_v21 = vsel %vm1785_vm6, %v1786_v18, %v1784_v19 }
 0xdde   :  { %v1789_v13 = vmul.f32 %v4496_v20, %v1780_v15  ;;  %v1803_v22 = vadd.f32 1e-06, %v1787_v21 }
 0xde0   :  { %v1791_v24 = vsel %vm1790_vm7, %v1780_v15, %v1789_v13  ;;  %4497 = vrcp.f32 %v1803_v22 }
 0xde1   :  { %v1794_v25 = vsel %vm1792_vm8, %v1793_v23, %v1791_v24 }
 0xde2   :  { %v1804_v26 = vadd.f32 1e-06, %v1794_v25 }
 0xde4   :  { %4499 = vrcp.f32 %v1804_v26 }
 0xdea   :  { %v4498_v29 = vpop.eup %4497 }
 0xdeb   :  { %v1806_v31 = vmul.f32 %v4498_v29, %v1801_v28 }
 0xded   :  { %v1815_v33 = vadd.f32 %v3918_v30, %v1806_v31 }
 0xdee   :  { %v4500_v34 = vpop.eup %4499 }
 0xdef   :  { %v1808_v35 = vmul.f32 %v4500_v34, %v1802_v32  ;;  %4195 = vmatprep.mubr.msk.f32.mxu1 %vm230_vm0, %v1815_v33 }
 0xdf1   :  { %v1816_v36 = vadd.f32 %v3918_v30, %v1808_v35 }
 0xdf3   :  { %4196 = vmatmul.mubr.msk.f32.vlgmr.msra.gmra.mrb[20].mxu1 %vm230_vm0, %v1816_v36 }
 0xdf4   :  { %4392 = vmatpush3.bf16.msra.mxu1 %v4389_v41 }
 0xdf5   :  { %4394 = vmatprep.subr.bf16.mxu1 %v4393_v7 }
 0xdf8   :  { %4396 = vmatpush3.bf16.msra.mxu1 %v4393_v7 }
 0xdf9   :  { %4228 = vmatprep.subr.mxu1 %v4890_v8 }
 0xec6   :  { %v4197_v43 = vpop.f32.mrb[20].mxu1 }
 0xec7   :  { %v1906_v46 = vadd.f32 %v4197_v43, %v3919_v42  ;;  %v1900_v48 = vpop.f32.mrb[21].mxu1 }
 0xec8   :  { %v1901_v49 = vadd.f32 %v3919_v42, %v1900_v48 }
 0xec9   :  { %v1910_v51 = vmax.f32 %v1906_v46, 0.0 }
 0xeca   :  { %v1909_v50 = vmax.f32 %v1901_v49, 0.0 }
 0xecc   :  { %4214 = vmatprep.mubr.msk.f32.mxu0 %vm1926_vm9, %v1909_v50 }
 0xecd   :  { %4215 = vmatmul.mubr.msk.f32.vlgmr.msra.gmra.mrb[16].mxu0 %vm1926_vm9, %v1910_v51 }
 0xece   :  { %4240 = vmatprep.mubr.msk.f32.mxu0 %vm4891_vm1, %v4890_v8 }
 0xfa0   :  { %v4216_v5 = vpop.f32.mrb[16].mxu0 }
 0xfa1   :  { %v2005_v55 = vadd.f32 %v4216_v5, %v3922_v54  ;;  %v1999_v56 = vpop.f32.mrb[17].mxu0 }
 0xfa2   :  { %v2000_v57 = vadd.f32 %v3922_v54, %v1999_v56 }
 0xfa3   :  { %v5397_v59 = vadd.f32 %v2005_v55, %v5372_v45 }
 0xfa4   :  { %v5394_v58 = vadd.f32 %v2000_v57, %v5375_v47 }
 0xfa6   :  { %4225 = vmatprep.mubr.msk.f32.mxu1 %vm230_vm0, %v5394_v58 }
 0xfa7   :  { %4226 = vmatmul.mubr.msk.f32.vlgmr.msra.gmra.mrb[22].mxu1 %vm230_vm0, %v5397_v59 }
 0xfa8   :  { %4230 = vmatprep.mubr.msk.f32.mxu1 %vm4891_vm1, %v4890_v8 }
0x107a   :  { %v4227_v61 = vpop.f32.mrb[22].mxu1 }
0x107b   :  { %v5405_v62 = vadd.f32 %v4227_v61, %v3925_v60  ;;  %v2095_v63 = vpop.f32.mrb[23].mxu1 }
0x107c   :  { %v5407_v0 = vadd.f32 %v3925_v60, %v2095_v63 }
0x107d   :  { %2182 = vrot.lane.b32.xlu0 %v5405_v62, %s4892_s12 }
0x107e   :  { %2105 = vrot.lane.b32.xlu1 %v5407_v0, %s4892_s12 }
0x10ef   :  { %v2183_v47 = vpop.permute.xlu0 %2182 }
0x10f0   :  { %v2106_v45 = vpop.permute.xlu1 %2105 }
0x10f1   :  { %4229 = vmatpush3.xpose.msk.msra.mxu1 %vm315_vm2, %v2106_v45 }
0x10f2   :  { %4233 = vmatprep.subr.mxu1 %v4890_v8 }
0x10f4   :  { %4231 = vmatmul.mubr.msk.f32.vlgmr.msra.gmra.mrb[24].mxu1 %vm315_vm2, %v5407_v0 }
0x10f5   :  { %4234 = vmatpush3.xpose.msk.msra.mxu1 %vm315_vm2, %v2183_v47  ;;  %4235 = vmatprep.mubr.msk.f32.mxu1 %vm4891_vm1, %v4890_v8 }
0x10f6   :  { %4243 = vmatprep.subr.mxu1 %v4890_v8 }
0x10f8   :  { %4236 = vmatmul.mubr.msk.f32.vlgmr.msra.gmra.mrb[26].mxu1 %vm315_vm2, %v5405_v62 }
0x10f9   :  { %4245 = vmatprep.mubr.msk.f32.mxu1 %vm4891_vm1, %v4890_v8 }
0x11c7   :  { %v2177_v1 = vpop.f32.mrb[24].mxu1 }
0x11c8   :  { %v4232_v2 = vpop.f32.mrb[25].mxu1  ;;  %v2258_v3 = vsel %vm315_vm2, %v2177_v1, -inf }
0x11c9   :  { %2259 = vmax.xlane.f32.xlu1 %v2258_v3 }
0x11cb   :  { %v2254_v4 = vpop.f32.mrb[26].mxu1 }
0x11cc   :  { %v4237_v12 = vpop.f32.mrb[27].mxu1  ;;  %v2261_v6 = vsel %vm315_vm2, %v2254_v4, -inf }
0x11cd   :  { %2262 = vmax.xlane.f32.xlu0 %v2261_v6 }
0x11da   :  { %2280 = vrot.lane.b32.xlu1 %v5407_v0, %s4893_s6 }
0x11de   :  { %2434 = vrot.lane.b32.xlu1 %v5407_v0, %s4894_s18 }
0x11e2   :  { %2512 = vrot.lane.b32.xlu1 %v5405_v62, %s4894_s18 }
0x11e3   :  { %2356 = vrot.lane.b32.xlu0 %v5405_v62, %s4893_s6 }
0x1256   :  { %v2260_v9 = vpop.xlane.xlu1 %2259 }
0x1257   :  { %v2264_v10 = vsub.f32 %v2177_v1, %v2260_v9 }
0x1259   :  { %v2266_v11 = vmul.f32 1.442695, %v2264_v10 }
0x125a   :  { %v2281_v14 = vpop.permute.xlu1 %2280  ;;  %v2263_v15 = vpop.xlane.xlu0 %2262 }
0x125b   :  { %4501 = vpow2.f32 %v2266_v11  ;;  %v2265_v16 = vsub.f32 %v2254_v4, %v2263_v15  ;;  %4239 = vmatpush3.msra.mxu0 %v2281_v14 }
0x125c   :  { %4248 = vmatprep.subr.mxu0 %v4890_v8 }
0x125d   :  { %v2268_v17 = vmul.f32 1.442695, %v2265_v16 }
0x125e   :  { %v2357_v18 = vpop.permute.xlu0 %2356  ;;  %v2435_v22 = vpop.permute.xlu1 %2434 }
0x125f   :  { %4503 = vpow2.f32 %v2268_v17  ;;  %4244 = vmatpush3.msra.mxu1 %v2357_v18 }
0x1260   :  { %4253 = vmatprep.subr.mxu1 %v4890_v8 }
0x1262   :  { %v2513_v23 = vpop.permute.xlu1 %2512 }
0x1265   :  { %v4502_v19 = vpop.eup %4501 }
0x1266   :  { %v2270_v20 = vsel %vm315_vm2, %v4502_v19, 0.0 }
0x1267   :  { %2271 = vadd.xlane.f32.xlu1 %v2270_v20 }
0x1269   :  { %v4504_v21 = vpop.eup %4503 }
0x126a   :  { %v2273_v13 = vsel %vm315_vm2, %v4504_v21, 0.0 }
0x126b   :  { %2274 = vadd.xlane.f32.xlu0 %v2273_v13 }
0x1278   :  { %2510 = vrot.lane.b32.xlu1 %v5405_v62, %s4895_s9 }
0x1281   :  { %2432 = vrot.lane.b32.xlu0 %v5407_v0, %s4895_s9 }
0x12f4   :  { %v2272_v24 = vpop.xlane.xlu1 %2271 }
0x12f5   :  { %4505 = vrcp.f32 %v2272_v24 }
0x12f8   :  { %v2275_v25 = vpop.xlane.xlu0 %2274  ;;  %v2511_v31 = vpop.permute.xlu1 %2510 }
0x12f9   :  { %4507 = vrcp.f32 %v2275_v25 }
0x12fc   :  { %v2433_v30 = vpop.permute.xlu0 %2432 }
0x12ff   :  { %v4506_v26 = vpop.eup %4505 }
0x1300   :  { %v2277_v27 = vmul.f32 %v4506_v26, %v4502_v19 }
0x1302   :  { %4241 = vmatmul.mubr.msk.f32.vlgmr.msra.gmra.mrb[18].mxu0 %vm315_vm2, %v2277_v27 }
0x1303   :  { %v4508_v28 = vpop.eup %4507  ;;  %4249 = vmatpush3.xpose.msk.msra.mxu0 %vm315_vm2, %v2435_v22  ;;  %4250 = vmatprep.mubr.msk.f32.mxu0 %vm4891_vm1, %v4890_v8 }
0x1304   :  { %v2279_v29 = vmul.f32 %v4508_v28, %v4504_v21  ;;  %4258 = vmatprep.subr.mxu0 %v4890_v8 }
0x1306   :  { %4246 = vmatmul.mubr.msk.f32.vlgmr.msra.gmra.mrb[28].mxu1 %vm315_vm2, %v2279_v29  ;;  %4251 = vmatmul.mubr.msk.f32.vlgmr.msra.gmra.mrb[20].mxu0 %vm315_vm2, %v2433_v30 }
0x1307   :  { %4254 = vmatpush3.xpose.msk.msra.mxu1 %vm315_vm2, %v2513_v23  ;;  %4255 = vmatprep.mubr.msk.f32.mxu1 %vm4891_vm1, %v4890_v8 }
0x1308   :  { %4263 = vmatprep.subr.mxu1 %v4890_v8  ;;  %4260 = vmatprep.mubr.msk.f32.mxu0 %vm4891_vm1, %v4890_v8 }
0x130a   :  { %4256 = vmatmul.mubr.msk.f32.vlgmr.msra.gmra.mrb[30].mxu1 %vm315_vm2, %v2511_v31 }
0x130b   :  { %4265 = vmatprep.mubr.msk.f32.mxu1 %vm4891_vm1, %v4890_v8 }
0x13d5   :  { %v5459_v32 = vpop.f32.mrb[18].mxu0 }
0x13d6   :  { %v4242_v33 = vpop.f32.mrb[19].mxu0 }
0x13d9   :  { %v5461_v34 = vpop.f32.mrb[28].mxu1  ;;  %v2506_v35 = vpop.f32.mrb[20].mxu0 }
0x13da   :  { %v4247_v36 = vpop.f32.mrb[29].mxu1  ;;  %v4252_v37 = vpop.f32.mrb[21].mxu0  ;;  %v2588_v38 = vsel %vm315_vm2, %v2506_v35, -inf }
0x13db   :  { %2589 = vmax.xlane.f32.xlu0 %v2588_v38 }
0x13dd   :  { %v2584_v39 = vpop.f32.mrb[30].mxu1 }
0x13de   :  { %v4257_v44 = vpop.f32.mrb[31].mxu1  ;;  %v2591_v40 = vsel %vm315_vm2, %v2584_v39, -inf }
0x13df   :  { %2592 = vmax.xlane.f32.xlu1 %v2591_v40 }
0x13f0   :  { %2610 = vrot.lane.b32.xlu1 %v5407_v0, %s4896_s14 }
0x13f1   :  { %2686 = vrot.lane.b32.xlu0 %v5405_v62, %s4896_s14 }
0x13f4   :  { %2764 = vrot.lane.b32.xlu1 %v5407_v0, %s4897_s23 }
0x13f8   :  { %2842 = vrot.lane.b32.xlu1 %v5405_v62, %s4897_s23 }
0x13fc   :  { %2840 = vrot.lane.b32.xlu1 %v5405_v62, %s4898_s25 }
0x1468   :  { %v2590_v41 = vpop.xlane.xlu0 %2589 }
0x1469   :  { %v2594_v42 = vsub.f32 %v2506_v35, %v2590_v41 }
0x146b   :  { %v2596_v43 = vmul.f32 1.442695, %v2594_v42 }
0x146c   :  { %v2687_v46 = vpop.permute.xlu0 %2686  ;;  %v2593_v48 = vpop.xlane.xlu1 %2592 }
0x146d   :  { %4509 = vpow2.f32 %v2596_v43  ;;  %v2595_v49 = vsub.f32 %v2584_v39, %v2593_v48  ;;  %4264 = vmatpush3.msra.mxu1 %v2687_v46 }
0x146e   :  { %4273 = vmatprep.subr.mxu1 %v4890_v8 }
0x146f   :  { %v2598_v50 = vmul.f32 1.442695, %v2595_v49 }
0x1470   :  { %v2611_v51 = vpop.permute.xlu1 %2610 }
0x1471   :  { %4511 = vpow2.f32 %v2598_v50  ;;  %4259 = vmatpush3.msra.mxu0 %v2611_v51 }
0x1472   :  { %4268 = vmatprep.subr.mxu0 %v4890_v8 }
0x1474   :  { %v2765_v56 = vpop.permute.xlu1 %2764 }
0x1477   :  { %v4510_v52 = vpop.eup %4509 }
0x1478   :  { %v2600_v53 = vsel %vm315_vm2, %v4510_v52, 0.0  ;;  %v2843_v63 = vpop.permute.xlu1 %2842 }
0x1479   :  { %2601 = vadd.xlane.f32.xlu0 %v2600_v53 }
0x147b   :  { %v4512_v7 = vpop.eup %4511 }
0x147c   :  { %v2603_v54 = vsel %vm315_vm2, %v4512_v7, 0.0  ;;  %v2841_v1 = vpop.permute.xlu1 %2840 }
0x147d   :  { %2604 = vadd.xlane.f32.xlu0 %v2603_v54 }
0x1493   :  { %2762 = vrot.lane.b32.xlu0 %v5407_v0, %s4898_s25 }
0x1506   :  { %v2602_v5 = vpop.xlane.xlu0 %2601 }
0x1507   :  { %4513 = vrcp.f32 %v2602_v5 }
0x150a   :  { %v2605_v55 = vpop.xlane.xlu0 %2604 }
0x150b   :  { %4515 = vrcp.f32 %v2605_v55 }
0x150e   :  { %v2763_v47 = vpop.permute.xlu0 %2762 }
0x1511   :  { %v4514_v57 = vpop.eup %4513 }
0x1512   :  { %v2607_v60 = vmul.f32 %v4514_v57, %v4510_v52 }
0x1514   :  { %4261 = vmatmul.mubr.msk.f32.vlgmr.msra.gmra.mrb[22].mxu0 %vm315_vm2, %v2607_v60 }
0x1515   :  { %v4516_v61 = vpop.eup %4515  ;;  %4269 = vmatpush3.xpose.msk.msra.mxu0 %vm315_vm2, %v2765_v56  ;;  %4270 = vmatprep.mubr.msk.f32.mxu0 %vm4891_vm1, %v4890_v8 }
0x1516   :  { %v2609_v45 = vmul.f32 %v4516_v61, %v4512_v7  ;;  %4278 = vmatprep.subr.mxu0 %v4890_v8 }
0x1518   :  { %4266 = vmatmul.mubr.msk.f32.vlgmr.msra.gmra.mrb[32].mxu1 %vm315_vm2, %v2609_v45  ;;  %4271 = vmatmul.mubr.msk.f32.vlgmr.msra.gmra.mrb[24].mxu0 %vm315_vm2, %v2763_v47 }
0x1519   :  { %4274 = vmatpush3.xpose.msk.msra.mxu1 %vm315_vm2, %v2843_v63  ;;  %4275 = vmatprep.mubr.msk.f32.mxu1 %vm4891_vm1, %v4890_v8 }
0x151a   :  { %4283 = vmatprep.subr.mxu1 %v4890_v8  ;;  %4280 = vmatprep.mubr.msk.f32.mxu0 %vm4891_vm1, %v4890_v8 }
0x151c   :  { %4276 = vmatmul.mubr.msk.f32.vlgmr.msra.gmra.mrb[34].mxu1 %vm315_vm2, %v2841_v1 }
0x151d   :  { %4285 = vmatprep.mubr.msk.f32.mxu1 %vm4891_vm1, %v4890_v8 }
0x15e7   :  { %v5497_v2 = vpop.f32.mrb[22].mxu0 }
0x15e8   :  { %v4262_v3 = vpop.f32.mrb[23].mxu0 }
0x15e9   :  { %v3453_v3 = vld [vmem:[#allocation8 + $0x20] sm:$0xff] }
0x15eb   :  { %v5499_v4 = vpop.f32.mrb[32].mxu1  ;;  %v2836_v12 = vpop.f32.mrb[24].mxu0 }
0x15ec   :  { %v4267_v6 = vpop.f32.mrb[33].mxu1  ;;  %v4272_v9 = vpop.f32.mrb[25].mxu0  ;;  %v2918_v10 = vsel %vm315_vm2, %v2836_v12, -inf }
0x15ed   :  { %2919 = vmax.xlane.f32.xlu0 %v2918_v10  ;;  %v3456_v6 = vld [vmem:[#allocation8 + $0x38] sm:$0xff] }
0x15ef   :  { %v2914_v11 = vpop.f32.mrb[34].mxu1 }
0x15f0   :  { %v4277_v14 = vpop.f32.mrb[35].mxu1  ;;  %v2921_v15 = vsel %vm315_vm2, %v2914_v11, -inf }
0x15f1   :  { %2922 = vmax.xlane.f32.xlu1 %v2921_v15 }
0x1602   :  { %2940 = vrot.lane.b32.xlu1 %v5407_v0, %s4899_s22 }
0x1603   :  { %3016 = vrot.lane.b32.xlu0 %v5405_v62, %s4899_s22 }
0x1606   :  { %3094 = vrot.lane.b32.xlu1 %v5407_v0, %s4900_s0 }
0x160a   :  { %3172 = vrot.lane.b32.xlu1 %v5405_v62, %s4900_s0 }
0x160e   :  { %3170 = vrot.lane.b32.xlu1 %v5405_v62, %s4901_s24 }
0x167a   :  { %v2920_v16 = vpop.xlane.xlu0 %2919 }
0x167b   :  { %v2924_v17 = vsub.f32 %v2836_v12, %v2920_v16 }
0x167d   :  { %v2926_v18 = vmul.f32 1.442695, %v2924_v17 }
0x167e   :  { %v3017_v19 = vpop.permute.xlu0 %3016  ;;  %v2923_v20 = vpop.xlane.xlu1 %2922 }
0x167f   :  { %4517 = vpow2.f32 %v2926_v18  ;;  %v2925_v21 = vsub.f32 %v2914_v11, %v2923_v20  ;;  %4284 = vmatpush3.msra.mxu1 %v3017_v19 }
0x1680   :  { %4293 = vmatprep.subr.mxu1 %v4890_v8 }
0x1681   :  { %v2928_v13 = vmul.f32 1.442695, %v2925_v21 }
0x1682   :  { %v2941_v22 = vpop.permute.xlu1 %2940 }
0x1683   :  { %4519 = vpow2.f32 %v2928_v13  ;;  %4279 = vmatpush3.msra.mxu0 %v2941_v22 }
0x1684   :  { %4288 = vmatprep.subr.mxu0 %v4890_v8 }
0x1686   :  { %v3095_v29 = vpop.permute.xlu1 %3094 }
0x1689   :  { %v4518_v23 = vpop.eup %4517 }
0x168a   :  { %v2930_v24 = vsel %vm315_vm2, %v4518_v23, 0.0  ;;  %v3173_v35 = vpop.permute.xlu1 %3172 }
0x168b   :  { %2931 = vadd.xlane.f32.xlu0 %v2930_v24 }
0x168d   :  { %v4520_v25 = vpop.eup %4519 }
0x168e   :  { %v2933_v26 = vsel %vm315_vm2, %v4520_v25, 0.0  ;;  %v3171_v38 = vpop.permute.xlu1 %3170 }
0x168f   :  { %2934 = vadd.xlane.f32.xlu0 %v2933_v26 }
0x16a5   :  { %3092 = vrot.lane.b32.xlu0 %v5407_v0, %s4901_s24 }
0x1718   :  { %v2932_v27 = vpop.xlane.xlu0 %2931 }
0x1719   :  { %4521 = vrcp.f32 %v2932_v27  ;;  %v3952_v27 = vld [vmem:[#allocation10 + $0x1] ss:$0 sm:$0xff] }
0x171c   :  { %v2935_v28 = vpop.xlane.xlu0 %2934 }
0x171d   :  { %4523 = vrcp.f32 %v2935_v28 }
0x1720   :  { %v3093_v37 = vpop.permute.xlu0 %3092 }
0x1723   :  { %v4522_v30 = vpop.eup %4521 }
0x1724   :  { %v2937_v31 = vmul.f32 %v4522_v30, %v4518_v23 }
0x1726   :  { %4281 = vmatmul.mubr.msk.f32.vlgmr.msra.gmra.mrb[26].mxu0 %vm315_vm2, %v2937_v31 }
0x1727   :  { %v4524_v33 = vpop.eup %4523  ;;  %4289 = vmatpush3.xpose.msk.msra.mxu0 %vm315_vm2, %v3095_v29  ;;  %4290 = vmatprep.mubr.msk.f32.mxu0 %vm4891_vm1, %v4890_v8 }
0x1728   :  { %v2939_v36 = vmul.f32 %v4524_v33, %v4520_v25  ;;  %4298 = vmatprep.subr.mxu0 %v4890_v8 }
0x172a   :  { %4286 = vmatmul.mubr.msk.f32.vlgmr.msra.gmra.mrb[36].mxu1 %vm315_vm2, %v2939_v36  ;;  %4291 = vmatmul.mubr.msk.f32.vlgmr.msra.gmra.mrb[28].mxu0 %vm315_vm2, %v3093_v37 }
0x172b   :  { %4294 = vmatpush3.xpose.msk.msra.mxu1 %vm315_vm2, %v3173_v35  ;;  %4295 = vmatprep.mubr.msk.f32.mxu1 %vm4891_vm1, %v4890_v8 }
0x172c   :  { %4303 = vmatprep.subr.mxu1 %v4890_v8  ;;  %4300 = vmatprep.mubr.msk.f32.mxu0 %vm4891_vm1, %v4890_v8 }
0x172e   :  { %4296 = vmatmul.mubr.msk.f32.vlgmr.msra.gmra.mrb[38].mxu1 %vm315_vm2, %v3171_v38 }
0x172f   :  { %4305 = vmatprep.mubr.msk.f32.mxu1 %vm4891_vm1, %v4890_v8 }
0x17f9   :  { %v3012_v39 = vpop.f32.mrb[26].mxu0 }
0x17fa   :  { %v4282_v44 = vpop.f32.mrb[27].mxu0 }
0x17fd   :  { %v3088_v40 = vpop.f32.mrb[36].mxu1  ;;  %v3166_v41 = vpop.f32.mrb[28].mxu0 }
0x17fe   :  { %v4287_v42 = vpop.f32.mrb[37].mxu1  ;;  %v4292_v43 = vpop.f32.mrb[29].mxu0  ;;  %v3248_v46 = vsel %vm315_vm2, %v3166_v41, -inf }
0x17ff   :  { %3249 = vmax.xlane.f32.xlu0 %v3248_v46  ;;  %v3609_v43 = vld [vmem:[#allocation14 + $0x20] sm:$0xff]  ;;  %v3610_v46 = vld [vmem:[#allocation14 + $0x28] sm:$0xff] }
0x1801   :  { %v3244_v48 = vpop.f32.mrb[38].mxu1 }
0x1802   :  { %v4297_v49 = vpop.f32.mrb[39].mxu1  ;;  %v3251_v50 = vsel %vm315_vm2, %v3244_v48, -inf }
0x1803   :  { %3252 = vmax.xlane.f32.xlu1 %v3251_v50  ;;  %v4405_v49 = vpack.c.bf16 %v3610_v46, %v3609_v43  ;;  %v3612_v50 = vld [vmem:[#allocation14 + $0x38] sm:$0xff] }
0x1814   :  { %3270 = vrot.lane.b32.xlu1 %v5407_v0, %s4902_s27 }
0x1818   :  { %3424 = vrot.lane.b32.xlu1 %v5497_v2, %s4876_s21 }
0x181c   :  { %3426 = vrot.lane.b32.xlu1 %v5499_v4, %s4876_s21  ;;  %v3454_v4 = vld [vmem:[#allocation8 + $0x28] sm:$0xff] }
0x181d   :  { %v4397_v12 = vpack.c.bf16 %v3454_v4, %v3453_v3 }
0x1820   :  { %3434 = vrot.lane.b32.xlu1 %v3088_v40, %s4879_s28 }
0x188c   :  { %v3250_v8 = vpop.xlane.xlu0 %3249 }
0x188d   :  { %v3254_v51 = vsub.f32 %v3166_v41, %v3250_v8 }
0x188f   :  { %v3256_v52 = vmul.f32 1.442695, %v3254_v51  ;;  %v3705_v51 = vld [vmem:[#allocation17 + $0x40] sm:$0xff] }
0x1890   :  { %v3253_v53 = vpop.xlane.xlu1 %3252 }
0x1891   :  { %4525 = vpow2.f32 %v3256_v52  ;;  %v3255_v7 = vsub.f32 %v3244_v48, %v3253_v53  ;;  %v3611_v48 = vld [vmem:[#allocation14 + $0x30] sm:$0xff] }
0x1892   :  { %v4409_v8 = vpack.c.bf16 %v3612_v50, %v3611_v48  ;;  %v3706_v52 = vld [vmem:[#allocation17 + $0x48] sm:$0xff]  ;;  %v3707_v53 = vld [vmem:[#allocation17 + $0x50] sm:$0xff] }
0x1893   :  { %v3258_v54 = vmul.f32 1.442695, %v3255_v7  ;;  %v4413_v7 = vpack.c.bf16 %v3706_v52, %v3705_v51 }
0x1894   :  { %v3271_v5 = vpop.permute.xlu1 %3270 }
0x1895   :  { %4527 = vpow2.f32 %v3258_v54  ;;  %4299 = vmatpush3.msra.mxu0 %v3271_v5  ;;  %v3708_v54 = vld [vmem:[#allocation17 + $0x58] sm:$0xff] }
0x1896   :  { %4398 = vmatprep.subr.bf16.mxu0 %v4397_v12  ;;  %v4417_v5 = vpack.c.bf16 %v3708_v54, %v3707_v53 }
0x1898   :  { %v3425_v16 = vpop.permute.xlu1 %3424 }
0x1899   :  { %v3446_v19 = vsel %vm315_vm2, %v5459_v32, %v3425_v16 }
0x189b   :  { %v4526_v55 = vpop.eup %4525 }
0x189c   :  { %v3260_v0 = vsel %vm315_vm2, %v4526_v55, 0.0  ;;  %v3427_v17 = vpop.permute.xlu1 %3426 }
0x189d   :  { %3261 = vadd.xlane.f32.xlu0 %v3260_v0  ;;  %v3447_v23 = vsel %vm315_vm2, %v5461_v34, %v3427_v17  ;;  %v3710_v0 = vld [vmem:[#allocation17 + $0x68] sm:$0xff]  ;;  %v3956_v17 = vld [vmem:[#allocation13 + $0x1] ss:$0 sm:$0xff] }
0x189f   :  { %v4528_v56 = vpop.eup %4527 }
0x18a0   :  { %v3263_v57 = vsel %vm315_vm2, %v4528_v56, 0.0  ;;  %v3435_v20 = vpop.permute.xlu1 %3434 }
0x18a1   :  { %3264 = vadd.xlane.f32.xlu0 %v3263_v57  ;;  %v3449_v24 = vsel %vm1657_vm4, %v3447_v23, %v3435_v20  ;;  %v3711_v23 = vld [vmem:[#allocation17 + $0x70] sm:$0xff] }
0x18b7   :  { %3346 = vrot.lane.b32.xlu0 %v5405_v62, %s4902_s27  ;;  %v3455_v62 = vld [vmem:[#allocation8 + $0x30] sm:$0xff] }
0x18b8   :  { %v4401_v9 = vpack.c.bf16 %v3456_v6, %v3455_v62 }
0x18bb   :  { %3432 = vrot.lane.b32.xlu0 %v3012_v39, %s4879_s28  ;;  %s4904_s28 = smov [#allocation23]  }
0x18bc   :  { %s3869_s8 = sshll.u32 %s4904_s28, 4  ;;  %s3870_s8 = int_to_ptr.vmem [resolvable:$true] %s3869_s8 }
0x18bd   :  { %s4835_s29 = scalar_lea.vmem %s3870_s8, 256  ;;  %p4840_p7 = scmp.lt.s32.totalorder %s3870_s8, %s3870_s8 }
0x18be   :  { %p4836_p6 = scmp.ne.s32.totalorder %s3870_s8, %s4835_s29  ;;  %p4841_p8 = scmp.lt.s32.totalorder %s4835_s29, %s4835_s29 }
0x18c0   :  { %p4842_p9 = por %p4841_p8, %p4840_p7 }
0x18c2   :  { %p4843_p10 = pnand %p4842_p9, %p4836_p6 }
0x192a   :  { %v3262_v60 = vpop.xlane.xlu0 %3261 }
0x192b   :  { %4529 = vrcp.f32 %v3262_v60 }
0x192e   :  { %v3265_v61 = vpop.xlane.xlu0 %3264 }
0x192f   :  { %4531 = vrcp.f32 %v3265_v61 }
0x1932   :  { %v3347_v63 = vpop.permute.xlu0 %3346 }
0x1933   :  { %4304 = vmatpush3.msra.mxu1 %v3347_v63 }
0x1934   :  { %4406 = vmatprep.subr.bf16.mxu1 %v4405_v49 }
0x1935   :  { %v4530_v45 = vpop.eup %4529 }
0x1936   :  { %v3267_v47 = vmul.f32 %v4530_v45, %v4526_v55  ;;  %v3433_v18 = vpop.permute.xlu0 %3432  ;;  %v3709_v55 = vld [vmem:[#allocation17 + $0x60] sm:$0xff] }
0x1937   :  { %v3448_v21 = vsel %vm1657_vm4, %v3446_v19, %v3433_v18 }
0x1938   :  { %4301 = vmatmul.mubr.msk.f32.vlgmr.msra.gmra.mrb[30].mxu0 %vm315_vm2, %v3267_v47 }
0x1939   :  { %v4532_v1 = vpop.eup %4531  ;;  %4400 = vmatpush3.bf16.msra.mxu0 %v4397_v12 }
0x193a   :  { %v3269_v2 = vmul.f32 %v4532_v1, %v4528_v56  ;;  %4402 = vmatprep.subr.bf16.mxu0 %v4401_v9  ;;  %v4421_v56 = vpack.c.bf16 %v3710_v0, %v3709_v55 }
0x193c   :  { %4306 = vmatmul.mubr.msk.f32.vlgmr.msra.gmra.mrb[40].mxu1 %vm315_vm2, %v3269_v2 }
0x193d   :  { %4404 = vmatpush3.bf16.msra.mxu0 %v4401_v9  ;;  %4408 = vmatpush3.bf16.msra.mxu1 %v4405_v49 }
0x193e   :  { %4410 = vmatprep.subr.bf16.mxu1 %v4409_v8  ;;  %4414 = vmatprep.subr.bf16.mxu0 %v4413_v7 }
0x1941   :  { %4412 = vmatpush3.bf16.msra.mxu1 %v4409_v8 }
0x1a0b   :  { %v3342_v10 = vpop.f32.mrb[30].mxu0 }
0x1a0c   :  { %3440 = vrot.lane.b32.xlu0 %v3342_v10, %s4903_s4  ;;  %v4302_v11 = vpop.f32.mrb[31].mxu0 }
0x1a0f   :  { %v3418_v14 = vpop.f32.mrb[40].mxu1 }
0x1a10   :  { %3442 = vrot.lane.b32.xlu1 %v3418_v14, %s4903_s4  ;;  %v4307_v15 = vpop.f32.mrb[41].mxu1  ;;  %v3955_v14 = vld [vmem:[#allocation11 + $0x1] ss:$0 sm:$0xff] }
0x1a7e   :  { %v3441_v13 = vpop.permute.xlu0 %3440 }
0x1a7f   :  { %v3450_v22 = vsel %vm1660_vm3, %v3448_v21, %v3441_v13 }
0x1a80   :  { %4316 = vmatprep.mubr.msk.f32.mxu0 %vm230_vm0, %v3450_v22 }
0x1a82   :  { %v3443_v25 = vpop.permute.xlu1 %3442 }
0x1a83   :  { %v3451_v26 = vsel %vm1660_vm3, %v3449_v24, %v3443_v25  ;;  %v3712_v24 = vld [vmem:[#allocation17 + $0x78] sm:$0xff] }
0x1a84   :  { %4317 = vmatmul.mubr.msk.f32.vlgmr.msra.gmra.mrb[32].mxu0 %vm230_vm0, %v3451_v26  ;;  %v4425_v25 = vpack.c.bf16 %v3712_v24, %v3711_v23  ;;  %v3957_v26 = vld [vmem:[#allocation16 + $0x1] ss:$0 sm:$0xff] }
0x1a85   :  { %4416 = vmatpush3.bf16.msra.mxu0 %v4413_v7 }
0x1a86   :  { %4418 = vmatprep.subr.bf16.mxu0 %v4417_v5 }
0x1a89   :  { %4420 = vmatpush3.bf16.msra.mxu0 %v4417_v5 }
0x1a8a   :  { %4422 = vmatprep.subr.bf16.mxu0 %v4421_v56 }
0x1a8d   :  { %4424 = vmatpush3.bf16.msra.mxu0 %v4421_v56 }
0x1a8e   :  { %4426 = vmatprep.subr.bf16.mxu0 %v4425_v25 }
0x1a91   :  { %4428 = vmatpush3.bf16.msra.mxu0 %v4425_v25 }
0x1b57   :  { %v4318_v32 = vpop.f32.mrb[32].mxu0 }
0x1b58   :  { %v3543_v28 = vadd.f32 %v4318_v32, %v3952_v27  ;;  %v3537_v29 = vpop.f32.mrb[33].mxu0 }
0x1b59   :  { %v3538_v30 = vadd.f32 %v3952_v27, %v3537_v29 }
0x1b5a   :  { %v5564_v31 = vadd.f32 %v3543_v28, %v5397_v59 }
0x1b5b   :  { %v5567_v33 = vadd.f32 %v3538_v30, %v5394_v58 }
0x1b5c   :  { %v3555_v34 = vsel %vm230_vm0, %v5564_v31, 0.0 }
0x1b5d   :  { %3556 = vadd.xlane.f32.xlu1 %v3555_v34  ;;  %v3552_v35 = vsel %vm230_vm0, %v5567_v33, 0.0 }
0x1b5e   :  { %3553 = vadd.xlane.f32.xlu0 %v3552_v35  ;;  %v3960_v35 = vld [vmem:[#allocation19 + $0x1] ss:$0 sm:$0xff] }
0x1bea   :  { %v3557_v36 = vpop.xlane.xlu1 %3556 }
0x1beb   :  { %v3559_v37 = vmul.f32 0.03125, %v3557_v36  ;;  %v3554_v38 = vpop.xlane.xlu0 %3553 }
0x1bec   :  { %v3558_v39 = vmul.f32 0.03125, %v3554_v38 }
0x1bed   :  { %v3561_v44 = vsub.f32 %v5564_v31, %v3559_v37 }
0x1bee   :  { %v3560_v59 = vsub.f32 %v5567_v33, %v3558_v39 }
0x1bef   :  { %v3563_v41 = vmul.f32 %v3561_v44, %v3561_v44  ;;  %v3593_v19 = vmul.f32 %v3955_v14, %v3561_v44 }
0x1bf0   :  { %v3562_v40 = vmul.f32 %v3560_v59, %v3560_v59  ;;  %v3592_v15 = vmul.f32 %v3955_v14, %v3560_v59 }
0x1bf1   :  { %v3567_v42 = vsel %vm230_vm0, %v3563_v41, 0.0 }
0x1bf2   :  { %v3564_v58 = vsel %vm230_vm0, %v3562_v40, 0.0 }
0x1bf3   :  { %3565 = vadd.xlane.f32.xlu0 %v3564_v58 }
0x1bf7   :  { %3568 = vadd.xlane.f32.xlu0 %v3567_v42 }
0x1c80   :  { %v3566_v57 = vpop.xlane.xlu0 %3565 }
0x1c81   :  { %v3570_v60 = vmul.f32 0.032258064, %v3566_v57 }
0x1c83   :  { %4533 = vrsqrt.f32 %v3570_v60  ;;  %vm3574_vm10 = vcmp.eq.f32.partialorder %v3570_v60, inf  ;;  %v3577_v1 = vand.u32 2147483648, %v3570_v60  ;;  %vm3576_vm11 = vcmp.eq.f32.partialorder %v3570_v60, 0.0 }
0x1c84   :  { %v3569_v61 = vpop.xlane.xlu0 %3568 }
0x1c85   :  { %v3571_v63 = vmul.f32 0.032258064, %v3569_v61 }
0x1c87   :  { %4535 = vrsqrt.f32 %v3571_v63  ;;  %vm3581_vm12 = vcmp.eq.f32.partialorder %v3571_v63, inf  ;;  %v3584_v6 = vand.u32 2147483648, %v3571_v63  ;;  %vm3583_vm13 = vcmp.eq.f32.partialorder %v3571_v63, 0.0 }
0x1c8d   :  { %v4534_v45 = vpop.eup %4533 }
0x1c8e   :  { %v3573_v47 = vmul.f32 %v4534_v45, %v3570_v60 }
0x1c90   :  { %v3575_v2 = vsel %vm3574_vm10, %v3570_v60, %v3573_v47 }
0x1c91   :  { %v4536_v3 = vpop.eup %4535  ;;  %v3578_v4 = vsel %vm3576_vm11, %v3577_v1, %v3575_v2  ;;  %v3963_v2 = vld [vmem:[#allocation20] ss:$0 sm:$0xff] }
0x1c92   :  { %v3580_v12 = vmul.f32 %v4536_v3, %v3571_v63  ;;  %v3594_v62 = vadd.f32 1e-06, %v3578_v4 }
0x1c94   :  { %v3582_v9 = vsel %vm3581_vm12, %v3571_v63, %v3580_v12  ;;  %4537 = vrcp.f32 %v3594_v62  ;;  %v3964_v62 = vld [vmem:[#allocation22] ss:$0 sm:$0xff] }
0x1c95   :  { %v3585_v10 = vsel %vm3583_vm13, %v3584_v6, %v3582_v9 }
0x1c96   :  { %v3595_v11 = vadd.f32 1e-06, %v3585_v10 }
0x1c98   :  { %4539 = vrcp.f32 %v3595_v11 }
0x1c9e   :  { %v4538_v16 = vpop.eup %4537 }
0x1c9f   :  { %v3597_v18 = vmul.f32 %v4538_v16, %v3592_v15 }
0x1ca1   :  { %v3606_v20 = vadd.f32 %v3956_v17, %v3597_v18 }
0x1ca2   :  { %v4540_v21 = vpop.eup %4539 }
0x1ca3   :  { %v3599_v13 = vmul.f32 %v4540_v21, %v3593_v19  ;;  %4327 = vmatprep.mubr.msk.f32.mxu1 %vm230_vm0, %v3606_v20 }
0x1ca5   :  { %v3607_v22 = vadd.f32 %v3956_v17, %v3599_v13 }
0x1ca7   :  { %4328 = vmatmul.mubr.msk.f32.vlgmr.msra.gmra.mrb[42].mxu1 %vm230_vm0, %v3607_v22 }
0x1d7a   :  { %v4329_v27 = vpop.f32.mrb[42].mxu1 }
0x1d7b   :  { %v3699_v32 = vadd.f32 %v4329_v27, %v3957_v26  ;;  %v3693_v28 = vpop.f32.mrb[43].mxu1 }
0x1d7c   :  { %v3694_v29 = vadd.f32 %v3957_v26, %v3693_v28 }
0x1d7d   :  { %v3703_v34 = vmax.f32 %v3699_v32, 0.0 }
0x1d7e   :  { %v3702_v30 = vmax.f32 %v3694_v29, 0.0 }
0x1d80   :  { %4346 = vmatprep.mubr.msk.f32.mxu0 %vm1926_vm9, %v3702_v30 }
0x1d81   :  { %4347 = vmatmul.mubr.msk.f32.vlgmr.msra.gmra.mrb[34].mxu0 %vm1926_vm9, %v3703_v34 }
0x1e54   :  { %v4348_v36 = vpop.f32.mrb[34].mxu0 }
0x1e55   :  { %v3799_v37 = vadd.f32 %v4348_v36, %v3960_v35  ;;  %v3793_v38 = vpop.f32.mrb[35].mxu0 }
0x1e56   :  { %v3794_v39 = vadd.f32 %v3960_v35, %v3793_v38 }
0x1e57   :  { %v3803_v44 = vadd.f32 %v3799_v37, %v5564_v31 }
0x1e58   :  { %v3802_v59 = vadd.f32 %v3794_v39, %v5567_v33 }
0x1e59   :  { %v3809_v40 = vsel %vm230_vm0, %v3803_v44, 0.0 }
0x1e5a   :  { %3810 = vadd.xlane.f32.xlu0 %v3809_v40  ;;  %v3806_v58 = vsel %vm230_vm0, %v3802_v59, 0.0 }
0x1e5b   :  { %3807 = vadd.xlane.f32.xlu1 %v3806_v58 }
0x1ee7   :  { %v3811_v41 = vpop.xlane.xlu0 %3810 }
0x1ee8   :  { %v3813_v42 = vmul.f32 0.03125, %v3811_v41  ;;  %v3808_v43 = vpop.xlane.xlu1 %3807 }
0x1ee9   :  { %v3812_v46 = vmul.f32 0.03125, %v3808_v43 }
0x1eea   :  { %v3815_v48 = vsub.f32 %v3803_v44, %v3813_v42 }
0x1eeb   :  { %v3814_v49 = vsub.f32 %v3802_v59, %v3812_v46 }
0x1eec   :  { %v3817_v50 = vmul.f32 %v3815_v48, %v3815_v48  ;;  %v3847_v3 = vmul.f32 %v3963_v2, %v3815_v48 }
0x1eed   :  { %v3816_v8 = vmul.f32 %v3814_v49, %v3814_v49  ;;  %v3846_v12 = vmul.f32 %v3963_v2, %v3814_v49 }
0x1eee   :  { %v3821_v51 = vsel %vm230_vm0, %v3817_v50, 0.0 }
0x1eef   :  { %3822 = vadd.xlane.f32.xlu0 %v3821_v51  ;;  %v3818_v31 = vsel %vm230_vm0, %v3816_v8, 0.0 }
0x1ef0   :  { %3819 = vadd.xlane.f32.xlu1 %v3818_v31 }
0x1f7c   :  { %v3823_v33 = vpop.xlane.xlu0 %3822 }
0x1f7d   :  { %v3825_v52 = vmul.f32 0.032258064, %v3823_v33  ;;  %v3820_v53 = vpop.xlane.xlu1 %3819 }
0x1f7e   :  { %v3824_v7 = vmul.f32 0.032258064, %v3820_v53 }
0x1f7f   :  { %4541 = vrsqrt.f32 %v3825_v52  ;;  %vm3835_vm14 = vcmp.eq.f32.partialorder %v3825_v52, inf  ;;  %v3838_v0 = vand.u32 2147483648, %v3825_v52  ;;  %vm3837_vm15 = vcmp.eq.f32.partialorder %v3825_v52, 0.0 }
0x1f80   :  { %4543 = vrsqrt.f32 %v3824_v7  ;;  %vm3828_vm1 = vcmp.eq.f32.partialorder %v3824_v7, inf  ;;  %v3831_v60 = vand.u32 2147483648, %v3824_v7  ;;  %vm3830_vm2 = vcmp.eq.f32.partialorder %v3824_v7, 0.0 }
0x1f89   :  { %v4542_v54 = vpop.eup %4541 }
0x1f8a   :  { %v4544_v5 = vpop.eup %4543  ;;  %v3834_v55 = vmul.f32 %v4542_v54, %v3825_v52 }
0x1f8b   :  { %v3827_v56 = vmul.f32 %v4544_v5, %v3824_v7 }
0x1f8c   :  { %v3836_v57 = vsel %vm3835_vm14, %v3825_v52, %v3834_v55 }
0x1f8d   :  { %v3839_v61 = vsel %vm3837_vm15, %v3838_v0, %v3836_v57  ;;  %v3829_v63 = vsel %vm3828_vm1, %v3824_v7, %v3827_v56 }
0x1f8e   :  { %v3849_v45 = vadd.f32 1e-06, %v3839_v61  ;;  %v3832_v47 = vsel %vm3830_vm2, %v3831_v60, %v3829_v63 }
0x1f8f   :  { %v3848_v1 = vadd.f32 1e-06, %v3832_v47 }
0x1f90   :  { %4545 = vrcp.f32 %v3849_v45 }
0x1f91   :  { %4547 = vrcp.f32 %v3848_v1 }
0x1f9a   :  { %v4546_v4 = vpop.eup %4545 }
0x1f9b   :  { %v4548_v6 = vpop.eup %4547  ;;  %v3853_v9 = vmul.f32 %v4546_v4, %v3847_v3 }
0x1f9c   :  { %v3851_v10 = vmul.f32 %v4548_v6, %v3846_v12 }
0x1f9d   :  { %v3861_v11 = vadd.f32 %v3964_v62, %v3853_v9 }
0x1f9e   :  { %v3860_v14 = vadd.f32 %v3964_v62, %v3851_v10 }
0x1f9f   :  { %3863 = vst.msk [vmem:[#allocation23 + $0x8] sm:$0xff] %vm230_vm0, %v3861_v11 }
0x1fa0   :  { %3862 = vst.msk [vmem:[#allocation23] sm:$0xff] %vm230_vm0, %v3860_v14 }
0x1fa1   :  { %4846 = shalt.err (!%p4843_p10)
}
0x1fa2   :  { %s4847_s3 = scalar_lea.hbm %s5617_s13, 256 }
0x1fa3   :  { %p4848_p11 = scmp.ne.s32.totalorder %s5617_s13, %s4847_s3  ;;  %p4851_p12 = scmp.lt.u32.totalorder %s4847_s3, %s5617_s13 }
0x1fa5   :  { %p4853_p13 = pnand %p4851_p12, %p4848_p11 }
0x1fa7   :  { %4856 = shalt.err (!%p4853_p13)
}
0x1fa8   :  { %3875 = dma.vmem_to_hbm [thread:$0]  %s3870_s8, 256, %s5617_s13, [#allocation4], %s4875_s20, %s4875_s20, %s4876_s21  }
0x1fa9   :  { %4871 = dma.done.wait [#allocation4], 256  }
0x1faa   :  { %4872 = vsyncadd [#allocation4], 4294967040 }
0x1fab   :  { %3879 = vsyncpa [#allocation3], 1 }
0x1fac   :  { %3880 = vsyncpa [#allocation6], 1 }
0x1fad   :  { %3881 = vsyncpa [#allocation9], 1 }
0x1fae   :  { %3882 = vsyncpa [#allocation12], 1 }
0x1faf   :  { %3883 = vsyncpa [#allocation15], 1 }
0x1fb0   :  { %3884 = vsyncpa [#allocation18], 1 }
0x1fb1   :  { %3885 = vsyncpa [#allocation21], 1 }
0x1fb2   :  { %3886 = vsyncpa [#allocation4], 1 }

</bundles_post_ra>
